<compile_context>
chip_gen: v5e
topology: v5e:2x2
jax: 0.10.0
libtpu: 0.0.40
codegen_flags: <defaults>
</compile_context>

<pallas_src>
import numpy as np
import jax
import jax.numpy as jnp
from jax.experimental import pallas as pl
from jax.experimental.pallas import tpu as pltpu

# ---- model hyper-parameters (consistent with the PyTorch module) -------------
DIM = 32          # dim
HEADS = 2         # heads
HEAD_DIM = 16     # head_dim
INNER = HEADS * HEAD_DIM          # 32
MLP_DIM = 64      # mlp_dim
WINDOW = 4        # window_size
SHIFTED = True
LN_EPS = 1e-5
# finite stand-in for float('-inf'); exp() underflows to exactly 0 in fp32 after
# row-max subtraction, so softmax matches the -inf version bit-for-bit.
NEG_BIG = -1e9


# ------------------------------ fused Pallas kernel ----------------------------
def fused_swin_kernel(x_ref, mask_ref, wa_ref, w1_ref, w2_ref, vec_ref, o_ref):
    """Whole Swin block for ONE batch image, in original token order.

    x_ref:    (1, P, DIM)      tokens of one image, row-major (i*n_w + j)
    mask_ref: (P, P)           bias with shift/window structure baked in
    wa_ref:   (DIM, 3*INNER+DIM)  [Wqkv (Q pre-scaled) | Wout]
    w1_ref:   (DIM, MLP_DIM)   MLP first linear
    w2_ref:   (MLP_DIM, DIM)   MLP second linear
    vec_ref:  (8, MLP_DIM)     packed gains / biases (see pack_params)
    """
    x = x_ref[0]                                          # (P, DIM) fp32

    g1    = vec_ref[0:1, :DIM]
    b1ln  = vec_ref[1:2, :DIM]
    bout  = vec_ref[2:3, :DIM]
    g2    = vec_ref[3:4, :DIM]
    b2ln  = vec_ref[4:5, :DIM]
    b2mlp = vec_ref[5:6, :DIM]
    b1mlp = vec_ref[6:7, :MLP_DIM]

    # ---- LN1 (PreNorm of the attention block) ----
    mean = jnp.mean(x, axis=-1, keepdims=True)
    var = jnp.mean((x - mean) ** 2, axis=-1, keepdims=True)
    xn = (x - mean) * jax.lax.rsqrt(var + LN_EPS) * g1 + b1ln

    wqkv = wa_ref[:, :3 * INNER]                          # (DIM, 96), Q pre-scaled
    wout = wa_ref[:, 3 * INNER:]                          # (INNER, DIM)
    qkv = jnp.dot(xn, wqkv, preferred_element_type=jnp.float32)   # (P, 96)

    mask = mask_ref[...]                                  # (P, P)

    # HEADS == 2: unrolled at trace time.  Full P x P scores per head; window
    # structure + cyclic-shift wrap handled entirely by the additive mask.
    pv = []
    for h in range(HEADS):
        q = qkv[:, h * HEAD_DIM:(h + 1) * HEAD_DIM]               # scale pre-folded
        k = qkv[:, INNER + h * HEAD_DIM:INNER + (h + 1) * HEAD_DIM]
        v = qkv[:, 2 * INNER + h * HEAD_DIM:2 * INNER + (h + 1) * HEAD_DIM]

        s = jax.lax.dot_general(q, k, (((1,), (1,)), ((), ())),
                                preferred_element_type=jnp.float32) + mask
        s = s - jnp.max(s, axis=-1, keepdims=True)
        p = jnp.exp(s)
        p = p * pl.reciprocal(jnp.sum(p, axis=-1, keepdims=True), approx=True)
        pv.append(jnp.dot(p, v, preferred_element_type=jnp.float32))   # (P, HD)

    pv = jnp.concatenate(pv, axis=-1)                     # (P, INNER), head-major
    x = x + jnp.dot(pv, wout, preferred_element_type=jnp.float32) + bout

    # ---- LN2 + MLP (Residual(PreNorm(FeedForward))), fused in-VMEM ----
    mean = jnp.mean(x, axis=-1, keepdims=True)
    var = jnp.mean((x - mean) ** 2, axis=-1, keepdims=True)
    xn2 = (x - mean) * jax.lax.rsqrt(var + LN_EPS) * g2 + b2ln

    hmid = jnp.dot(xn2, w1_ref[...], preferred_element_type=jnp.float32) + b1mlp
    hmid = 0.5 * hmid * (1.0 + jax.lax.erf(hmid * jnp.float32(0.7071067811865476)))
    y = jnp.dot(hmid, w2_ref[...], preferred_element_type=jnp.float32) + b2mlp

    o_ref[0] = (x + y).astype(o_ref.dtype)


def swin_fused_pallas(x_tok, mask_tok, wa, w1, w2, vec):
    B, P, D = x_tok.shape
    fixed = lambda arr: pl.BlockSpec(arr.shape, lambda b: (0,) * arr.ndim)
    return pl.pallas_call(
        fused_swin_kernel,
        out_shape=jax.ShapeDtypeStruct((B, P, D), x_tok.dtype),
        grid=(B,),                                # one image per step
        in_specs=[
            pl.BlockSpec((1, P, D), lambda b: (b, 0, 0)),   # x
            fixed(mask_tok),                                # (P, P), DMA'd once
            fixed(wa),                                      # [Wqkv | Wout]
            fixed(w1),
            fixed(w2),
            fixed(vec),                                     # packed gains/biases
        ],
        out_specs=pl.BlockSpec((1, P, D), lambda b: (b, 0, 0)),
        compiler_params=pltpu.CompilerParams(
            dimension_semantics=("parallel",)),   # v7x: shard batch over both TCs
    )(x_tok, mask_tok, wa, w1, w2, vec)


# ------------------------------ host-side precompute ---------------------------
def create_mask_np(window_size, displacement, upper_lower, left_right):
    mask = np.zeros((window_size ** 2, window_size ** 2), np.float32)
    if upper_lower:
        mask[-displacement * window_size:, :-displacement * window_size] = NEG_BIG
        mask[:-displacement * window_size, -displacement * window_size:] = NEG_BIG
    if left_right:
        mask = mask.reshape(window_size, window_size, window_size, window_size)
        mask[:, -displacement:, :, :-displacement] = NEG_BIG
        mask[:, :-displacement, :, -displacement:] = NEG_BIG
        mask = mask.reshape(window_size ** 2, window_size ** 2)
    return mask


def relative_pos_bias_np(pos_embedding, window_size):
    idx = np.array([[x, y] for x in range(window_size) for y in range(window_size)])
    rel = idx[None, :, :] - idx[:, None, :] + window_size - 1
    return np.asarray(pos_embedding, np.float32)[rel[:, :, 0], rel[:, :, 1]]


def per_window_bias_np(pos_bias, nw_h, nw_w):
    """(NW, T, T) rel-pos bias per window plus the shifted-window masks."""
    nw = nw_h * nw_w
    per_win = np.tile(np.asarray(pos_bias, np.float32)[None], (nw, 1, 1))
    if SHIFTED:
        disp = WINDOW // 2
        ul = create_mask_np(WINDOW, disp, True, False)
        lr = create_mask_np(WINDOW, disp, False, True)
        for w in range(nw):
            if w >= nw - nw_w:            # dots[:, :, -nw_w:]       += upper_lower
                per_win[w] += ul
            if w % nw_w == nw_w - 1:      # dots[:, :, nw_w-1::nw_w] += left_right
                per_win[w] += lr
    return per_win


def window_permutation_np(n_h, n_w):
    """window-order position -> original flat token index (within one image)."""
    disp = WINDOW // 2 if SHIFTED else 0
    nw_h, nw_w = n_h // WINDOW, n_w // WINDOW
    perm = np.zeros(n_h * n_w, np.int64)
    pos = 0
    for wh in range(nw_h):
        for ww in range(nw_w):
            for a in range(WINDOW):
                for b in range(WINDOW):
                    src_i = (wh * WINDOW + a + disp) % n_h
                    src_j = (ww * WINDOW + b + disp) % n_w
                    perm[pos] = src_i * n_w + src_j
                    pos += 1
    return perm


def build_token_order_mask(pos_embedding, n_h, n_w):
    """(P, P) attention bias in ORIGINAL token order; shift + windowing baked in."""
    nw_h, nw_w = n_h // WINDOW, n_w // WINDOW
    T = WINDOW * WINDOW
    P = n_h * n_w
    pos_bias = relative_pos_bias_np(pos_embedding, WINDOW)
    per_win = per_window_bias_np(pos_bias, nw_h, nw_w)        # (NW, T, T)
    # block-diagonal mask in WINDOW order
    win_mask = np.full((P, P), NEG_BIG, np.float32)
    for g in range(nw_h * nw_w):
        win_mask[g * T:(g + 1) * T, g * T:(g + 1) * T] = per_win[g]
    # permute rows/cols back to original token order: mask_tok[p, r] =
    # win_mask[inv[p], inv[r]] — the runtime gather is now a static table.
    perm = window_permutation_np(n_h, n_w)
    inv = np.argsort(perm)
    mask_tok = win_mask[np.ix_(inv, inv)]
    return jnp.asarray(mask_tok), jnp.asarray(per_win)


def pack_params(p):
    """Pre-scale Q columns, concat [Wqkv | Wout] (32,128), pack small vectors."""
    scale = HEAD_DIM ** -0.5
    wqkv = np.asarray(p['wqkv'], np.float32).copy()
    wqkv[:, :INNER] *= scale
    wa = np.concatenate([wqkv, np.asarray(p['wout'], np.float32)], axis=1)
    vec = np.zeros((8, MLP_DIM), np.float32)
    vec[0, :DIM] = np.asarray(p['ln1_g'], np.float32).reshape(-1)
    vec[1, :DIM] = np.asarray(p['ln1_b'], np.float32).reshape(-1)
    vec[2, :DIM] = np.asarray(p['bout'], np.float32).reshape(-1)
    vec[3, :DIM] = np.asarray(p['ln2_g'], np.float32).reshape(-1)
    vec[4, :DIM] = np.asarray(p['ln2_b'], np.float32).reshape(-1)
    vec[5, :DIM] = np.asarray(p['b2'], np.float32).reshape(-1)
    vec[6, :MLP_DIM] = np.asarray(p['b1'], np.float32).reshape(-1)
    return (jnp.asarray(wa), jnp.asarray(p['w1']), jnp.asarray(p['w2']),
            jnp.asarray(vec))


def swin_block_pallas(x, mask_tok, wa, w1, w2, vec):
    """No gathers: just a contiguous reshape, fused kernel, reshape back."""
    b, n_h, n_w, d = x.shape
    x_tok = x.reshape(b, n_h * n_w, d)
    y = swin_fused_pallas(x_tok, mask_tok, wa, w1, w2, vec)
    return y.reshape(b, n_h, n_w, d)


# ------------------------------ pure-JAX reference -----------------------------
def _layernorm(x, g, b):
    mean = jnp.mean(x, -1, keepdims=True)
    var = jnp.mean((x - mean) ** 2, -1, keepdims=True)
    return (x - mean) * jax.lax.rsqrt(var + LN_EPS) * g + b


def swin_block_ref(x, p):
    # attention
    xn = _layernorm(x, p['ln1_g'], p['ln1_b'])
    if SHIFTED:
        disp = WINDOW // 2
        xn = jnp.roll(xn, (-disp, -disp), axis=(1, 2))
    b, n_h, n_w, _ = xn.shape
    nw_h, nw_w = n_h // WINDOW, n_w // WINDOW
    qkv = xn @ p['wqkv']

    def rearr(t):
        t = t.reshape(b, nw_h, WINDOW, nw_w, WINDOW, HEADS, HEAD_DIM)
        t = t.transpose(0, 5, 1, 3, 2, 4, 6)
        return t.reshape(b, HEADS, nw_h * nw_w, WINDOW * WINDOW, HEAD_DIM)

    q, k, v = map(rearr, jnp.split(qkv, 3, axis=-1))
    dots = jnp.einsum('bhwid,bhwjd->bhwij', q, k) * (HEAD_DIM ** -0.5)
    dots = dots + p['bias_mask'][None, None]
    attn = jax.nn.softmax(dots, axis=-1)
    out = jnp.einsum('bhwij,bhwjd->bhwid', attn, v)
    out = out.reshape(b, HEADS, nw_h, nw_w, WINDOW, WINDOW, HEAD_DIM)
    out = out.transpose(0, 2, 4, 3, 5, 1, 6).reshape(b, n_h, n_w, INNER)
    out = out @ p['wout'] + p['bout']
    if SHIFTED:
        out = jnp.roll(out, (disp, disp), axis=(1, 2))
    x = x + out
    # mlp
    xn = _layernorm(x, p['ln2_g'], p['ln2_b'])
    h = xn @ p['w1'] + p['b1']
    h = 0.5 * h * (1.0 + jax.lax.erf(h / jnp.sqrt(2.0)))
    return x + (h @ p['w2'] + p['b2'])


# ------------------------------ main --------------------------------------------
if __name__ == "__main__":
    key = jax.random.PRNGKey(0)
    ks = jax.random.split(key, 10)

    B, N_H, N_W = 2, 8, 8

    pos_embedding = np.asarray(
        jax.random.normal(ks[1], (2 * WINDOW - 1, 2 * WINDOW - 1), jnp.float32))

    params = {
        'ln1_g': jnp.ones((1, DIM), jnp.float32),
        'ln1_b': jnp.zeros((1, DIM), jnp.float32),
        'wqkv': jax.random.normal(ks[0], (DIM, 3 * INNER), jnp.float32) * 0.05,
        'wout': jax.random.normal(ks[2], (INNER, DIM), jnp.float32) * 0.05,
        'bout': jax.random.normal(ks[3], (1, DIM), jnp.float32) * 0.02,
        'ln2_g': jnp.ones((1, DIM), jnp.float32),
        'ln2_b': jnp.zeros((1, DIM), jnp.float32),
        'w1': jax.random.normal(ks[4], (DIM, MLP_DIM), jnp.float32) * 0.05,
        'b1': jax.random.normal(ks[5], (1, MLP_DIM), jnp.float32) * 0.02,
        'w2': jax.random.normal(ks[6], (MLP_DIM, DIM), jnp.float32) * 0.05,
        'b2': jax.random.normal(ks[7], (1, DIM), jnp.float32) * 0.02,
    }

    mask_tok, per_win = build_token_order_mask(pos_embedding, N_H, N_W)
    params['bias_mask'] = per_win                         # used by the reference
    wa, w1, w2, vec = pack_params(params)

    x = jax.random.normal(ks[8], (B, N_H, N_W, DIM), jnp.float32)

    fwd = jax.jit(lambda xx: swin_block_pallas(xx, mask_tok, wa, w1, w2, vec))
    out = jax.block_until_ready(fwd(x))
    ref = jax.block_until_ready(jax.jit(lambda xx: swin_block_ref(xx, params))(x))
    np.testing.assert_allclose(np.asarray(out), np.asarray(ref),
                               rtol=1e-3, atol=1e-3)
    print("KERNEL_OK")
</pallas_src>

<mosaic_0001>
module attributes {stable_mosaic.version = 11 : i64} {
  func.func @fused_swin_kernel(%arg0: i32, %arg1: memref<1x64x32xf32, #tpu.memory_space<vmem>>, %arg2: memref<64x64xf32, #tpu.memory_space<vmem>>, %arg3: memref<32x128xf32, #tpu.memory_space<vmem>>, %arg4: memref<32x64xf32, #tpu.memory_space<vmem>>, %arg5: memref<64x32xf32, #tpu.memory_space<vmem>>, %arg6: memref<8x64xf32, #tpu.memory_space<vmem>>, %arg7: memref<1x64x32xf32, #tpu.memory_space<vmem>>) attributes {dimension_semantics = [#tpu.dimension_semantics<parallel>], iteration_bounds = array<i64: 2>, scalar_prefetch = 0 : i64, scratch_operands = 0 : i64, tpu.core_type = #tpu.core_type<tc>, window_params = [{transform_indices = @transform_0, window_bounds = array<i64: 1, 64, 32>}, {pipeline_mode = #tpu.pipeline_mode<synchronous>, transform_indices = @transform_1, window_bounds = array<i64: 64, 64>}, {pipeline_mode = #tpu.pipeline_mode<synchronous>, transform_indices = @transform_2, window_bounds = array<i64: 32, 128>}, {pipeline_mode = #tpu.pipeline_mode<synchronous>, transform_indices = @transform_3, window_bounds = array<i64: 32, 64>}, {pipeline_mode = #tpu.pipeline_mode<synchronous>, transform_indices = @transform_4, window_bounds = array<i64: 64, 32>}, {pipeline_mode = #tpu.pipeline_mode<synchronous>, transform_indices = @transform_5, window_bounds = array<i64: 8, 64>}, {transform_indices = @transform_6, window_bounds = array<i64: 1, 64, 32>}]} {
    %c0 = arith.constant 0 : index
    %c0_0 = arith.constant 0 : index
    %c0_1 = arith.constant 0 : index
    %0 = vector.load %arg1[%c0, %c0_0, %c0_1] : memref<1x64x32xf32, #tpu.memory_space<vmem>>, vector<1x64x32xf32>
    %1 = vector.shape_cast %0 : vector<1x64x32xf32> to vector<64x32xf32>
    %c0_2 = arith.constant 0 : index
    %c0_3 = arith.constant 0 : index
    %2 = vector.load %arg6[%c0_2, %c0_3] : memref<8x64xf32, #tpu.memory_space<vmem>>, vector<1x32xf32>
    %c1 = arith.constant 1 : index
    %c0_4 = arith.constant 0 : index
    %3 = vector.load %arg6[%c1, %c0_4] : memref<8x64xf32, #tpu.memory_space<vmem>>, vector<1x32xf32>
    %c2 = arith.constant 2 : index
    %c0_5 = arith.constant 0 : index
    %4 = vector.load %arg6[%c2, %c0_5] : memref<8x64xf32, #tpu.memory_space<vmem>>, vector<1x32xf32>
    %c3 = arith.constant 3 : index
    %c0_6 = arith.constant 0 : index
    %5 = vector.load %arg6[%c3, %c0_6] : memref<8x64xf32, #tpu.memory_space<vmem>>, vector<1x32xf32>
    %c4 = arith.constant 4 : index
    %c0_7 = arith.constant 0 : index
    %6 = vector.load %arg6[%c4, %c0_7] : memref<8x64xf32, #tpu.memory_space<vmem>>, vector<1x32xf32>
    %c5 = arith.constant 5 : index
    %c0_8 = arith.constant 0 : index
    %7 = vector.load %arg6[%c5, %c0_8] : memref<8x64xf32, #tpu.memory_space<vmem>>, vector<1x32xf32>
    %c6 = arith.constant 6 : index
    %c0_9 = arith.constant 0 : index
    %8 = vector.load %arg6[%c6, %c0_9] : memref<8x64xf32, #tpu.memory_space<vmem>>, vector<1x64xf32>
    %cst = arith.constant dense<0.000000e+00> : vector<64xf32>
    %9 = vector.multi_reduction <add>, %1, %cst [1] : vector<64x32xf32> to vector<64xf32>
    %10 = vector.shape_cast %9 : vector<64xf32> to vector<64x1xf32>
    %cst_10 = arith.constant 3.200000e+01 : f32
    %11 = vector.broadcast %cst_10 : f32 to vector<64x1xf32>
    %12 = arith.divf %10, %11 : vector<64x1xf32>
    %13 = vector.broadcast %12 : vector<64x1xf32> to vector<64x32xf32>
    %14 = arith.subf %1, %13 : vector<64x32xf32>
    %15 = arith.mulf %14, %14 : vector<64x32xf32>
    %cst_11 = arith.constant dense<0.000000e+00> : vector<64xf32>
    %16 = vector.multi_reduction <add>, %15, %cst_11 [1] : vector<64x32xf32> to vector<64xf32>
    %17 = vector.shape_cast %16 : vector<64xf32> to vector<64x1xf32>
    %cst_12 = arith.constant 3.200000e+01 : f32
    %18 = vector.broadcast %cst_12 : f32 to vector<64x1xf32>
    %19 = arith.divf %17, %18 : vector<64x1xf32>
    %20 = vector.broadcast %12 : vector<64x1xf32> to vector<64x32xf32>
    %21 = arith.subf %1, %20 : vector<64x32xf32>
    %cst_13 = arith.constant 9.99999974E-6 : f32
    %22 = vector.broadcast %cst_13 : f32 to vector<64x1xf32>
    %23 = arith.addf %19, %22 : vector<64x1xf32>
    %24 = math.rsqrt %23 : vector<64x1xf32>
    %25 = vector.broadcast %24 : vector<64x1xf32> to vector<64x32xf32>
    %26 = arith.mulf %21, %25 : vector<64x32xf32>
    %27 = vector.broadcast %2 : vector<1x32xf32> to vector<64x32xf32>
    %28 = arith.mulf %26, %27 : vector<64x32xf32>
    %29 = vector.broadcast %3 : vector<1x32xf32> to vector<64x32xf32>
    %30 = arith.addf %28, %29 : vector<64x32xf32>
    %c0_14 = arith.constant 0 : index
    %c0_15 = arith.constant 0 : index
    %31 = vector.load %arg3[%c0_14, %c0_15] : memref<32x128xf32, #tpu.memory_space<vmem>>, vector<32x96xf32>
    %c0_16 = arith.constant 0 : index
    %c96 = arith.constant 96 : index
    %32 = vector.load %arg3[%c0_16, %c96] : memref<32x128xf32, #tpu.memory_space<vmem>>, vector<32x32xf32>
    %cst_17 = arith.constant dense<0.000000e+00> : vector<64x96xf32>
    %33 = tpu.matmul %30, %31, %cst_17 {dimension_numbers = #tpu.dot_dimension_numbers<[1], [0], [0], [1], [0, 0, 1, 1], [], []>} : vector<64x32xf32>, vector<32x96xf32>, vector<64x96xf32> -> vector<64x96xf32>
    %c0_18 = arith.constant 0 : index
    %c0_19 = arith.constant 0 : index
    %34 = vector.load %arg2[%c0_18, %c0_19] : memref<64x64xf32, #tpu.memory_space<vmem>>, vector<64x64xf32>
    %35 = vector.extract_strided_slice %33 {offsets = [0, 0], sizes = [64, 16], strides = [1, 1]} : vector<64x96xf32> to vector<64x16xf32>
    %36 = vector.extract_strided_slice %33 {offsets = [0, 32], sizes = [64, 16], strides = [1, 1]} : vector<64x96xf32> to vector<64x16xf32>
    %37 = vector.extract_strided_slice %33 {offsets = [0, 64], sizes = [64, 16], strides = [1, 1]} : vector<64x96xf32> to vector<64x16xf32>
    %cst_20 = arith.constant dense<0.000000e+00> : vector<64x64xf32>
    %38 = tpu.matmul %35, %36, %cst_20 {dimension_numbers = #tpu.dot_dimension_numbers<[1], [1], [0], [0], [0, 0, 1, 0], [], []>} : vector<64x16xf32>, vector<64x16xf32>, vector<64x64xf32> -> vector<64x64xf32>
    %39 = arith.addf %38, %34 : vector<64x64xf32>
    %cst_21 = arith.constant dense<0xFF800000> : vector<64xf32>
    %40 = vector.multi_reduction <maximumf>, %39, %cst_21 [1] : vector<64x64xf32> to vector<64xf32>
    %41 = vector.shape_cast %40 : vector<64xf32> to vector<64x1xf32>
    %42 = vector.broadcast %41 : vector<64x1xf32> to vector<64x64xf32>
    %43 = arith.subf %39, %42 : vector<64x64xf32>
    %44 = math.exp %43 : vector<64x64xf32>
    %cst_22 = arith.constant dense<0.000000e+00> : vector<64xf32>
    %45 = vector.multi_reduction <add>, %44, %cst_22 [1] : vector<64x64xf32> to vector<64xf32>
    %46 = vector.shape_cast %45 : vector<64xf32> to vector<64x1xf32>
    %47 = tpu.reciprocal %46 {approx = true} : vector<64x1xf32> -> vector<64x1xf32>
    %48 = vector.broadcast %47 : vector<64x1xf32> to vector<64x64xf32>
    %49 = arith.mulf %44, %48 : vector<64x64xf32>
    %cst_23 = arith.constant dense<0.000000e+00> : vector<64x16xf32>
    %50 = tpu.matmul %49, %37, %cst_23 {dimension_numbers = #tpu.dot_dimension_numbers<[1], [0], [0], [1], [0, 0, 1, 1], [], []>} : vector<64x64xf32>, vector<64x16xf32>, vector<64x16xf32> -> vector<64x16xf32>
    %51 = vector.extract_strided_slice %33 {offsets = [0, 16], sizes = [64, 16], strides = [1, 1]} : vector<64x96xf32> to vector<64x16xf32>
    %52 = vector.extract_strided_slice %33 {offsets = [0, 48], sizes = [64, 16], strides = [1, 1]} : vector<64x96xf32> to vector<64x16xf32>
    %53 = vector.extract_strided_slice %33 {offsets = [0, 80], sizes = [64, 16], strides = [1, 1]} : vector<64x96xf32> to vector<64x16xf32>
    %cst_24 = arith.constant dense<0.000000e+00> : vector<64x64xf32>
    %54 = tpu.matmul %51, %52, %cst_24 {dimension_numbers = #tpu.dot_dimension_numbers<[1], [1], [0], [0], [0, 0, 1, 0], [], []>} : vector<64x16xf32>, vector<64x16xf32>, vector<64x64xf32> -> vector<64x64xf32>
    %55 = arith.addf %54, %34 : vector<64x64xf32>
    %cst_25 = arith.constant dense<0xFF800000> : vector<64xf32>
    %56 = vector.multi_reduction <maximumf>, %55, %cst_25 [1] : vector<64x64xf32> to vector<64xf32>
    %57 = vector.shape_cast %56 : vector<64xf32> to vector<64x1xf32>
    %58 = vector.broadcast %57 : vector<64x1xf32> to vector<64x64xf32>
    %59 = arith.subf %55, %58 : vector<64x64xf32>
    %60 = math.exp %59 : vector<64x64xf32>
    %cst_26 = arith.constant dense<0.000000e+00> : vector<64xf32>
    %61 = vector.multi_reduction <add>, %60, %cst_26 [1] : vector<64x64xf32> to vector<64xf32>
    %62 = vector.shape_cast %61 : vector<64xf32> to vector<64x1xf32>
    %63 = tpu.reciprocal %62 {approx = true} : vector<64x1xf32> -> vector<64x1xf32>
    %64 = vector.broadcast %63 : vector<64x1xf32> to vector<64x64xf32>
    %65 = arith.mulf %60, %64 : vector<64x64xf32>
    %cst_27 = arith.constant dense<0.000000e+00> : vector<64x16xf32>
    %66 = tpu.matmul %65, %53, %cst_27 {dimension_numbers = #tpu.dot_dimension_numbers<[1], [0], [0], [1], [0, 0, 1, 1], [], []>} : vector<64x64xf32>, vector<64x16xf32>, vector<64x16xf32> -> vector<64x16xf32>
    %67 = tpu.concatenate %50, %66 in 1 : vector<64x16xf32>, vector<64x16xf32> -> vector<64x32xf32>
    %cst_28 = arith.constant dense<0.000000e+00> : vector<64x32xf32>
    %68 = tpu.matmul %67, %32, %cst_28 {dimension_numbers = #tpu.dot_dimension_numbers<[1], [0], [0], [1], [0, 0, 1, 1], [], []>} : vector<64x32xf32>, vector<32x32xf32>, vector<64x32xf32> -> vector<64x32xf32>
    %69 = arith.addf %1, %68 : vector<64x32xf32>
    %70 = vector.broadcast %4 : vector<1x32xf32> to vector<64x32xf32>
    %71 = arith.addf %69, %70 : vector<64x32xf32>
    %cst_29 = arith.constant dense<0.000000e+00> : vector<64xf32>
    %72 = vector.multi_reduction <add>, %71, %cst_29 [1] : vector<64x32xf32> to vector<64xf32>
    %73 = vector.shape_cast %72 : vector<64xf32> to vector<64x1xf32>
    %cst_30 = arith.constant 3.200000e+01 : f32
    %74 = vector.broadcast %cst_30 : f32 to vector<64x1xf32>
    %75 = arith.divf %73, %74 : vector<64x1xf32>
    %76 = vector.broadcast %75 : vector<64x1xf32> to vector<64x32xf32>
    %77 = arith.subf %71, %76 : vector<64x32xf32>
    %78 = arith.mulf %77, %77 : vector<64x32xf32>
    %cst_31 = arith.constant dense<0.000000e+00> : vector<64xf32>
    %79 = vector.multi_reduction <add>, %78, %cst_31 [1] : vector<64x32xf32> to vector<64xf32>
    %80 = vector.shape_cast %79 : vector<64xf32> to vector<64x1xf32>
    %cst_32 = arith.constant 3.200000e+01 : f32
    %81 = vector.broadcast %cst_32 : f32 to vector<64x1xf32>
    %82 = arith.divf %80, %81 : vector<64x1xf32>
    %83 = vector.broadcast %75 : vector<64x1xf32> to vector<64x32xf32>
    %84 = arith.subf %71, %83 : vector<64x32xf32>
    %cst_33 = arith.constant 9.99999974E-6 : f32
    %85 = vector.broadcast %cst_33 : f32 to vector<64x1xf32>
    %86 = arith.addf %82, %85 : vector<64x1xf32>
    %87 = math.rsqrt %86 : vector<64x1xf32>
    %88 = vector.broadcast %87 : vector<64x1xf32> to vector<64x32xf32>
    %89 = arith.mulf %84, %88 : vector<64x32xf32>
    %90 = vector.broadcast %5 : vector<1x32xf32> to vector<64x32xf32>
    %91 = arith.mulf %89, %90 : vector<64x32xf32>
    %92 = vector.broadcast %6 : vector<1x32xf32> to vector<64x32xf32>
    %93 = arith.addf %91, %92 : vector<64x32xf32>
    %c0_34 = arith.constant 0 : index
    %c0_35 = arith.constant 0 : index
    %94 = vector.load %arg4[%c0_34, %c0_35] : memref<32x64xf32, #tpu.memory_space<vmem>>, vector<32x64xf32>
    %cst_36 = arith.constant dense<0.000000e+00> : vector<64x64xf32>
    %95 = tpu.matmul %93, %94, %cst_36 {dimension_numbers = #tpu.dot_dimension_numbers<[1], [0], [0], [1], [0, 0, 1, 1], [], []>} : vector<64x32xf32>, vector<32x64xf32>, vector<64x64xf32> -> vector<64x64xf32>
    %96 = vector.broadcast %8 : vector<1x64xf32> to vector<64x64xf32>
    %97 = arith.addf %95, %96 : vector<64x64xf32>
    %cst_37 = arith.constant 5.000000e-01 : f32
    %98 = vector.broadcast %cst_37 : f32 to vector<64x64xf32>
    %99 = arith.mulf %98, %97 : vector<64x64xf32>
    %cst_38 = arith.constant 0.707106769 : f32
    %100 = vector.broadcast %cst_38 : f32 to vector<64x64xf32>
    %101 = arith.mulf %97, %100 : vector<64x64xf32>
    %102 = math.erf %101 : vector<64x64xf32>
    %cst_39 = arith.constant 1.000000e+00 : f32
    %103 = vector.broadcast %cst_39 : f32 to vector<64x64xf32>
    %104 = arith.addf %103, %102 : vector<64x64xf32>
    %105 = arith.mulf %99, %104 : vector<64x64xf32>
    %c0_40 = arith.constant 0 : index
    %c0_41 = arith.constant 0 : index
    %106 = vector.load %arg5[%c0_40, %c0_41] : memref<64x32xf32, #tpu.memory_space<vmem>>, vector<64x32xf32>
    %cst_42 = arith.constant dense<0.000000e+00> : vector<64x32xf32>
    %107 = tpu.matmul %105, %106, %cst_42 {dimension_numbers = #tpu.dot_dimension_numbers<[1], [0], [0], [1], [0, 0, 1, 1], [], []>} : vector<64x64xf32>, vector<64x32xf32>, vector<64x32xf32> -> vector<64x32xf32>
    %108 = vector.broadcast %7 : vector<1x32xf32> to vector<64x32xf32>
    %109 = arith.addf %107, %108 : vector<64x32xf32>
    %110 = arith.addf %71, %109 : vector<64x32xf32>
    %c0_43 = arith.constant 0 : index
    %c0_44 = arith.constant 0 : index
    %c0_45 = arith.constant 0 : index
    %111 = vector.load %arg7[%c0_43, %c0_44, %c0_45] : memref<1x64x32xf32, #tpu.memory_space<vmem>>, vector<1x64x32xf32>
    %112 = vector.shape_cast %111 : vector<1x64x32xf32> to vector<64x32xf32>
    %113 = vector.shape_cast %110 : vector<64x32xf32> to vector<1x64x32xf32>
    tpu.vector_store %arg7[%c0_43, %c0_44, %c0_45], %113 {strides = array<i32>} : memref<1x64x32xf32, #tpu.memory_space<vmem>>, vector<1x64x32xf32>,
    return
  }
  func.func @transform_0(%arg0: i32) -> (i32, i32, i32) {
    %c0_i32 = arith.constant 0 : i32
    %c0_i32_0 = arith.constant 0 : i32
    %c0_i32_1 = arith.constant 0 : i32
    return %arg0, %c0_i32, %c0_i32_0 : i32, i32, i32
  }
  func.func @transform_1(%arg0: i32) -> (i32, i32) {
    %c0_i32 = arith.constant 0 : i32
    %c0_i32_0 = arith.constant 0 : i32
    %c0_i32_1 = arith.constant 0 : i32
    return %c0_i32, %c0_i32_0 : i32, i32
  }
  func.func @transform_2(%arg0: i32) -> (i32, i32) {
    %c0_i32 = arith.constant 0 : i32
    %c0_i32_0 = arith.constant 0 : i32
    %c0_i32_1 = arith.constant 0 : i32
    return %c0_i32, %c0_i32_0 : i32, i32
  }
  func.func @transform_3(%arg0: i32) -> (i32, i32) {
    %c0_i32 = arith.constant 0 : i32
    %c0_i32_0 = arith.constant 0 : i32
    %c0_i32_1 = arith.constant 0 : i32
    return %c0_i32, %c0_i32_0 : i32, i32
  }
  func.func @transform_4(%arg0: i32) -> (i32, i32) {
    %c0_i32 = arith.constant 0 : i32
    %c0_i32_0 = arith.constant 0 : i32
    %c0_i32_1 = arith.constant 0 : i32
    return %c0_i32, %c0_i32_0 : i32, i32
  }
  func.func @transform_5(%arg0: i32) -> (i32, i32) {
    %c0_i32 = arith.constant 0 : i32
    %c0_i32_0 = arith.constant 0 : i32
    %c0_i32_1 = arith.constant 0 : i32
    return %c0_i32, %c0_i32_0 : i32, i32
  }
  func.func @transform_6(%arg0: i32) -> (i32, i32, i32) {
    %c0_i32 = arith.constant 0 : i32
    %c0_i32_0 = arith.constant 0 : i32
    %c0_i32_1 = arith.constant 0 : i32
    return %arg0, %c0_i32, %c0_i32_0 : i32, i32, i32
  }
}

</mosaic_0001>

<bundles_post_ra>
// kernel: _lambda_.1
= control target key start
LH: loop header
LB: loop body
LE: loop exit
PB: predicated region body
PF: predicated region fallthrough
CT: control target
= control target key end

     0   :  { %11 = vsyncpa [#allocation3], 0  ;;  %s3883_s0 = inlined_call_operand.hbm [shape: f32[2,64,32], index: 0, kind: input, shape index: {}]   ;;  %s3884_s1 = inlined_call_operand.hbm [shape: f32[64,64], index: 1, kind: input, shape index: {}]   ;;  %s3885_s2 = inlined_call_operand.hbm [shape: f32[32,128], index: 2, kind: input, shape index: {}]   ;;  %s3886_s3 = inlined_call_operand.hbm [shape: f32[32,64], index: 3, kind: input, shape index: {}]   ;;  %s3887_s4 = inlined_call_operand.hbm [shape: f32[64,32], index: 4, kind: input, shape index: {}]   ;;  %s3888_s5 = inlined_call_operand.hbm [shape: f32[8,64], index: 5, kind: input, shape index: {}]   ;;  %s3889_s6 = inlined_call_operand.hbm [shape: f32[2,64,32], index: 6, kind: output, shape index: {}]  }
   0x1   :  { %13 = vsyncpa [#allocation3 + $0x1], 0 }
   0x2   :  { %14 = vsyncpa [#allocation6], 0 }
   0x3   :  { %15 = vsyncpa [#allocation9], 0 }
   0x4   :  { %16 = vsyncpa [#allocation12], 0 }
   0x5   :  { %17 = vsyncpa [#allocation4], 0 }
   0x6   :  { %19 = vsyncpa [#allocation4 + $0x1], 0  ;;  %s2904_s21 = smov 0   ;;  %s2906_s22 = smov 0  }
   0x7   :  { %s2908_s23 = smov 0   ;;  %s2910_s24 = smov 0  }
   0x8 LB: > { %s198_s27 = sshll.u32 %s3884_s1, 4  ;;  %s2928_s28 = sadd.s32 4294967295, %s2850_s24   ;;  %s2850_s24 = sphi %s2910_s24, %s3906_s24   ;;  %s2846_s23 = sphi %s2908_s23, %s3905_s23   ;;  %s2842_s22 = sphi %s2906_s22, %s3904_s22   ;;  %s2838_s21 = sphi %s2904_s21, %s3903_s21   ;;  %s199_s27 = int_to_ptr.hbm [resolvable:$true] %s198_s27 }
   0x9   : > { %p2187_p0 = scmp.ge.s32.totalorder %s2850_s24, 1  ;;  %p46_p1 = scmp.eq.s32.totalorder %s2928_s28, 0 }
   0xa   : > { %p187_p2 = scmp.lt.s32.totalorder %s2850_s24, 3  ;;  %s2852_s30 = smov [#allocation5]  }
   0xb   : > { %s200_s7 = sshll.u32 %s2852_s30, 4  ;;  %s226_s10 = sshll.u32 %s3886_s3, 4  ;;  %s201_s7 = int_to_ptr.vmem [resolvable:$true] %s200_s7  ;;  %s227_s10 = int_to_ptr.hbm [resolvable:$true] %s226_s10 }
   0xc   : > { %p2933_p3 = pnand %p2187_p0, %p187_p2  ;;  %s212_s14 = sshll.u32 %s3885_s2, 4  ;;  %s213_s14 = int_to_ptr.hbm [resolvable:$true] %s212_s14 }
   0xd   : > { %s2853_s15 = smov [#allocation8]   ;;  %s3890_s17 = smov 128  }
   0xe   : > { %p2328_p4 = pneg %p2933_p3  ;;  %s228_s16 = sshll.u32 %s2853_s15, 4  ;;  %s229_s16 = int_to_ptr.vmem [resolvable:$true] %s228_s16 }
   0xf   : > { %s3891_s18 = smov 8   ;;  %s240_s25 = sshll.u32 %s3887_s4, 4  ;;  %s241_s25 = int_to_ptr.hbm [resolvable:$true] %s240_s25 }
  0x10   : > { %p2945_p6 = pnand %p2328_p4, %p46_p1  ;;  %s2856_s26 = smov [#allocation7]  }
  0x11   : > { %s214_s30 = sshll.u32 %s2856_s26, 4  ;;  %s2858_s12 = smov [#allocation11]   ;;  %s215_s30 = int_to_ptr.vmem [resolvable:$true] %s214_s30 }
  0x12   : > { %2331 = dma.hbm_to_vmem [thread:$0]  (!%p2945_p6), %s199_s27, 1024, %s201_s7, [#allocation6], %s3890_s17, %s3890_s17, %s3891_s18  }
  0x13   : > { %2337 = dma.hbm_to_vmem [thread:$0]  (!%p2945_p6), %s227_s10, 512, %s229_s16, [#allocation9], %s3890_s17, %s3890_s17, %s3891_s18  }
  0x14   : > { %2334 = dma.hbm_to_vmem [thread:$0]  (!%p2945_p6), %s213_s14, 512, %s215_s30, [#allocation6], %s3890_s17, %s3890_s17, %s3891_s18  }
  0x15   : > { %s2857_s27 = smov [#allocation10]   ;;  %s255_s10 = sshll.u32 %s3888_s5, 4  ;;  %s256_s10 = int_to_ptr.hbm [resolvable:$true] %s255_s10 }
  0x16   : > { %s242_s7 = sshll.u32 %s2857_s27, 4  ;;  %s257_s13 = sshll.u32 %s2858_s12, 4  ;;  %s243_s7 = int_to_ptr.vmem [resolvable:$true] %s242_s7  ;;  %s258_s13 = int_to_ptr.vmem [resolvable:$true] %s257_s13 }
  0x17   : > { %2340 = dma.hbm_to_vmem [thread:$0]  (!%p2945_p6), %s241_s25, 1024, %s243_s7, [#allocation9], %s3890_s17, %s3890_s17, %s3891_s18  }
  0x18   : > { %2343 = dma.hbm_to_vmem [thread:$0]  (!%p2945_p6), %s256_s10, 128, %s258_s13, [#allocation12]  }
  0x19   : > { %s2186_s14 = sadd.s32 4294967294, %s2850_s24   ;;  %s2982_s15 = sadd.s32 1, %s2850_s24  }
  0x1a   : > { %s32_s16 = sadd.s32 1, %s2846_s23  ;;  %s29_s19 = ssub.s32 %s2850_s24, %s2982_s15 }
  0x1b   : > { %p39_p7 = scmp.ne.s32.totalorder %s2846_s23, %s2842_s22  ;;  %p30_p8 = scmp.eq.s32.totalorder %s29_s19, 0 }
  0x1c   : > { %p40_p9 = scmp.eq.s32.totalorder %s2850_s24, 0  ;;  %p45_p10 = scmp.ne.s32.totalorder %s2842_s22, %s2838_s21 }
  0x1d   : > { %p174_p11 = scmp.eq.s32.totalorder %s2928_s28, 1  ;;  %p180_p0 = scmp.eq.s32.totalorder %s2186_s14, 1 }
  0x1e   : > { %s2994_s20 = scalar_select %p30_p8, %s2846_s23, %s32_s16  }
  0x1f   : > { %p2998_p12 = por %p46_p1, %p45_p10  ;;  %p3002_p13 = por %p174_p11, %p39_p7 }
  0x20   : > { %p41_p2 = por %p40_p9, %p39_p7  ;;  %s268_s26 = sand.u32 1, %s2846_s23  }
  0x21   : > { %p3007_p4 = por %p180_p0, %p45_p10  ;;  %p2357_p6 = scmp.lt.s32.totalorder %s2850_s24, 2 }
  0x22   : > { %s2194_s27 = sshll.u32 %s268_s26, 6  ;;  %s2298_s7 = sshll.u32 %s2850_s24, 6 }
  0x23   : > { %s277_s10 = scalar_lea.hbm %s3883_s0, %s2298_s7  ;;  %s272_s13 = scalar_lea.vmem [#allocation2], %s2194_s27 }
  0x24   : > { %s278_s12 = sshll.u32 %s277_s10, 4  ;;  %s280_s16 = sshll.u32 %s272_s13, 4  ;;  %s279_s12 = int_to_ptr.hbm [resolvable:$true] %s278_s12  ;;  %s281_s16 = int_to_ptr.vmem [resolvable:$true] %s280_s16 }
  0x25   : > { %p3016_p8 = pnand %p2357_p6, %p41_p2  ;;  %s269_s19 = scalar_lea.sflag [#allocation3], %s268_s26 }
  0x26   : > { %s2742_s17 = sshra.s32 %s279_s12, 4  ;;  %s2749_s27 = scalar_lea.hbm %s3883_s0, 128  ;;  %s2743_s17 = int_to_ptr.hbm [resolvable:$true] %s2742_s17 }
  0x27   : > { %s2744_s18 = scalar_lea.hbm %s2743_s17, 64  ;;  %p2746_p9 = pneg %p3016_p8 }
  0x28   : > { %p2745_p7 = scmp.ne.s32.totalorder %s2743_s17, %s2744_s18  ;;  %p2750_p0 = scmp.lt.s32.totalorder %s2743_s17, %s3883_s0 }
  0x29   : > { %p2751_p2 = scmp.lt.s32.totalorder %s2749_s27, %s2744_s18 }
  0x2a   : > { %p2747_p10 = pnand %p2746_p9, %p2745_p7 }
  0x2b   : > { %p2752_p6 = por %p2751_p2, %p2750_p0 }
  0x2c   : > { %p2748_p11 = pneg %p2747_p10 }
  0x2e   : > { %p2753_p5 = pnand %p2752_p6, %p2748_p11 }
  0x30   : > { %2756 = shalt.err (!%p2753_p5)
}
  0x31   : > { %s3898_s26 = smov 8   ;;  %s3899_s13 = smov 128  }
  0x32   : > { %2347 = dma.hbm_to_vmem [thread:$0]  (!%p3016_p8), %s279_s12, 1024, %s281_s16, %s269_s19, %s3899_s13, %s3899_s13, %s3898_s26  }
  0x33   : > { %292 = sbr.rel (%p2933_p3) target bundleno = 2221 (0x8ad), region = 44  ;;  %s3036_s7 = sand.u32 (!%p2933_p3), 1, %s2842_s22  }
  0x34   : > { %s2198_s17 = sshll.u32 (!%p2933_p3), %s3036_s7, 6  ;;  %s295_s18 = scalar_lea.sflag (!%p2933_p3), [#allocation3], %s3036_s7 }
  0x35   : > { %s3042_s8 = scalar_lea.vmem (!%p2933_p3), [#allocation2], %s2198_s17 }
  0x38   : > { %2817 = dma.done.wait (%p2998_p12), %s295_s18, 1024  }
  0x39   : > { %2819 = vsyncadd (%p2998_p12), %s295_s18, 4294966272 }
  0x3a   : > { %2821 = dma.done.wait (%p46_p1), [#allocation6], 1536  }
  0x3b   : > { %2823 = vsyncadd (%p46_p1), [#allocation6], 4294965760 }
  0x3c   : > { %2825 = dma.done.wait (%p46_p1), [#allocation9], 1536  }
  0x3d   : > { %2827 = vsyncadd (%p46_p1), [#allocation9], 4294965760 }
  0x3e   : > { %2829 = dma.done.wait (%p46_p1), [#allocation12], 128  }
  0x3f   : > { %2831 = vsyncadd (%p46_p1), [#allocation12], 4294967168  ;;  %vm368_vm0 = vcmask 261120   ;;  %v357_v0 = vld [vmem:[%s3042_s8 + $0x20] sm:$0xff]  ;;  %v355_v1 = vld [vmem:[%s3042_s8 + $0x10] sm:$0xff]  ;;  %v2859_v14 = vmov 32.0  }
  0x40   : > { %v353_v2 = vld [vmem:[%s3042_s8] sm:$0xff]  ;;  %v381_v3 = vsel %vm368_vm0, %v357_v0, 0.0  ;;  %v375_v4 = vsel %vm368_vm0, %v355_v1, 0.0  ;;  %v358_v6 = vld [vmem:[%s3042_s8 + $0x28] sm:$0xff]  ;;  %v356_v8 = vld [vmem:[%s3042_s8 + $0x18] sm:$0xff]  ;;  %2470 = vrcp.f32 %v2859_v14  ;;  %s2860_s29 = smov 80  }
  0x41   : > { %v369_v5 = vsel %vm368_vm0, %v353_v2, 0.0  ;;  %382 = vadd.xlane.f32.xlu2 %v381_v3  ;;  %376 = vadd.xlane.f32.xlu1 %v375_v4  ;;  %v354_v7 = vld [vmem:[%s3042_s8 + $0x8] sm:$0xff]  ;;  %v384_v9 = vsel %vm368_vm0, %v358_v6, 0.0  ;;  %v378_v10 = vsel %vm368_vm0, %v356_v8, 0.0  ;;  %v359_v12 = vld [vmem:[%s3042_s8 + $0x30] sm:$0xff]  ;;  %v360_v40 = vld [vmem:[%s3042_s8 + $0x38] sm:$0xff] }
  0x42   : > { %370 = vadd.xlane.f32.xlu0 %v369_v5  ;;  %v372_v11 = vsel %vm368_vm0, %v354_v7, 0.0  ;;  %v387_v13 = vsel %vm368_vm0, %v359_v12, 0.0  ;;  %v390_v45 = vsel %vm368_vm0, %v360_v40, 0.0  ;;  %v3120_v58 = vld [vmem:[#allocation7 + $0x18] sm:$0xff]  ;;  %v3123_v59 = vld [vmem:[#allocation7 + $0x10] sm:$0xff]  ;;  %v3126_v60 = vld [vmem:[#allocation7 + $0x8] sm:$0xff] }
  0x43   : > { %610 = vmatpush.msra.mxu0 %v3120_v58  ;;  %v3129_v61 = vld [vmem:[#allocation7] sm:$0xff]  ;;  %v2453_v4 = vpack.i.bf16 %v3123_v59, %v3120_v58  ;;  %s2861_s11 = smov 112   ;;  %s2862_s12 = smov 96  }
  0x44   : > { %s2863_s16 = smov 48   ;;  %s2864_s14 = smov 64  }
  0x45   : > { %611 = vmatpush.msra.mxu0 %v3123_v59  ;;  %s2865_s19 = smov 32   ;;  %s2866_s27 = smov 16  }
  0x46   : > { %v2471_v15 = vpop.eup %2470  ;;  %s3824_s9 = scalar_lea.vmem [#allocation13], %s2198_s17  ;;  %s2299_s10 = sshll.u32 %s2928_s28, 6 }
  0x47   : > { %v394_v16 = vmul.f32 32.0, %v2471_v15  ;;  %vm398_vm1 = vweird.f32 %v2471_v15  ;;  %612 = vmatpush.msra.mxu0 %v3126_v60  ;;  %s2061_s17 = scalar_lea.hbm %s3889_s6, %s2299_s10  ;;  %s2062_s18 = sshll.u32 %s3824_s9, 4  ;;  %s2063_s18 = int_to_ptr.vmem [resolvable:$true] %s2062_s18 }
  0x49   : > { %385 = vadd.xlane.f32.xlu2 %v384_v9  ;;  %379 = vadd.xlane.f32.xlu1 %v378_v10  ;;  %v395_v17 = vsub.f32 1.0, %v394_v16 }
  0x4a   : > { %373 = vadd.xlane.f32.xlu0 %v372_v11  ;;  %613 = vmatpush.msra.mxu0 %v3129_v61 }
  0x4b   : > { %v396_v18 = vmul.f32 %v2471_v15, %v395_v17  ;;  %v2458_v17 = vpack.i.bf16 %v3129_v61, %v3126_v60 }
  0x4d   : > { %v397_v19 = vadd.f32 %v2471_v15, %v396_v18 }
  0x4f   : > { %v3074_v20 = vsel %vm398_vm1, %v2471_v15, %v397_v19 }
  0x51   : > { %388 = vadd.xlane.f32.xlu1 %v387_v13 }
  0xb4   : > { %v383_v21 = vpop.xlane.xlu2 %382  ;;  %v377_v22 = vpop.xlane.xlu1 %376 }
  0xb5   : > { %v402_v23 = vmul.f32 %v3074_v20, %v377_v22  ;;  %v371_v24 = vpop.xlane.xlu0 %370  ;;  %v404_v36 = vmul.f32 %v3074_v20, %v383_v21 }
  0xb6   : > { %v400_v25 = vmul.f32 %v3074_v20, %v371_v24 }
  0xb7   : > { %v3078_v26 = vsub.f32 %v355_v1, %v402_v23  ;;  %v3099_v43 = vsub.f32 %v357_v0, %v404_v36 }
  0xb8   : > { %v3080_v27 = vsub.f32 %v353_v2, %v400_v25 }
  0xb9   : > { %v418_v28 = vmul.f32 %v3078_v26, %v3078_v26  ;;  %v420_v51 = vmul.f32 %v3099_v43, %v3099_v43 }
  0xba   : > { %v416_v29 = vmul.f32 %v3080_v27, %v3080_v27 }
  0xbb   : > { %v430_v30 = vsel %vm368_vm0, %v418_v28, 0.0  ;;  %v436_v54 = vsel %vm368_vm0, %v420_v51, 0.0 }
  0xbc   : > { %v386_v31 = vpop.xlane.xlu2 %385  ;;  %431 = vadd.xlane.f32.xlu1 %v430_v30  ;;  %v424_v32 = vsel %vm368_vm0, %v416_v29, 0.0  ;;  %v380_v33 = vpop.xlane.xlu1 %379 }
  0xbd   : > { %v405_v34 = vmul.f32 %v3074_v20, %v386_v31  ;;  %425 = vadd.xlane.f32.xlu0 %v424_v32  ;;  %v374_v35 = vpop.xlane.xlu0 %373  ;;  %v403_v38 = vmul.f32 %v3074_v20, %v380_v33 }
  0xbe   : > { %v401_v37 = vmul.f32 %v3074_v20, %v374_v35 }
  0xbf   : > { %v3092_v39 = vsub.f32 %v358_v6, %v405_v34  ;;  %v3101_v44 = vsub.f32 %v356_v8, %v403_v38 }
  0xc0   : > { %v3095_v41 = vsub.f32 %v354_v7, %v401_v37  ;;  %v3158_v37 = vld [vmem:[#allocation11] ss:$0 sm:$0xff] }
  0xc1   : > { %v421_v42 = vmul.f32 %v3092_v39, %v3092_v39  ;;  %v419_v52 = vmul.f32 %v3101_v44, %v3101_v44 }
  0xc2   : > { %v417_v46 = vmul.f32 %v3095_v41, %v3095_v41 }
  0xc3   : > { %v439_v47 = vsel %vm368_vm0, %v421_v42, 0.0  ;;  %v433_v55 = vsel %vm368_vm0, %v419_v52, 0.0 }
  0xc4   : > { %440 = vadd.xlane.f32.xlu1 %v439_v47  ;;  %v427_v48 = vsel %vm368_vm0, %v417_v46, 0.0  ;;  %v389_v49 = vpop.xlane.xlu1 %388  ;;  %v3164_v46 = vld [vmem:[#allocation11 + $0x1] ss:$0 sm:$0xff] }
  0xc5   : > { %391 = vadd.xlane.f32.xlu0 %v390_v45  ;;  %428 = vadd.xlane.f32.xlu2 %v427_v48  ;;  %v406_v50 = vmul.f32 %v3074_v20, %v389_v49 }
  0xc7   : > { %v3113_v53 = vsub.f32 %v359_v12, %v406_v50 }
  0xc9   : > { %v422_v56 = vmul.f32 %v3113_v53, %v3113_v53 }
  0xcb   : > { %v442_v57 = vsel %vm368_vm0, %v422_v56, 0.0 }
  0xcd   : > { %437 = vadd.xlane.f32.xlu0 %v436_v54  ;;  %434 = vadd.xlane.f32.xlu2 %v433_v55 }
  0xd5   : > { %443 = vadd.xlane.f32.xlu2 %v442_v57 }
 0x12f   : > { %v432_v62 = vpop.xlane.xlu1 %431 }
 0x130   : > { %v450_v63 = vmul.f32 %v432_v62, %v3074_v20  ;;  %v426_v0 = vpop.xlane.xlu0 %425 }
 0x131   : > { %v448_v1 = vmul.f32 %v426_v0, %v3074_v20 }
 0x132   : > { %v3134_v2 = vadd.f32 1e-05, %v450_v63 }
 0x133   : > { %v456_v3 = vadd.f32 1e-05, %v448_v1 }
 0x134   : > { %2472 = vrsqrt.f32 %v3134_v2  ;;  %vm490_vm7 = vweird.f32 %v3134_v2 }
 0x135   : > { %2474 = vrsqrt.f32 %v456_v3  ;;  %vm470_vm3 = vweird.f32 %v456_v3 }
 0x137   : > { %v441_v18 = vpop.xlane.xlu1 %440 }
 0x138   : > { %v429_v5 = vpop.xlane.xlu2 %428  ;;  %v392_v6 = vpop.xlane.xlu0 %391  ;;  %v453_v31 = vmul.f32 %v441_v18, %v3074_v20 }
 0x139   : > { %v449_v7 = vmul.f32 %v429_v5, %v3074_v20  ;;  %v407_v8 = vmul.f32 %v3074_v20, %v392_v6 }
 0x13a   : > { %v3141_v9 = vpop.eup %2472  ;;  %v3161_v42 = vadd.f32 1e-05, %v453_v31 }
 0x13b   : > { %v2475_v10 = vpop.eup %2474  ;;  %v457_v11 = vadd.f32 1e-05, %v449_v7  ;;  %v3143_v12 = vsub.f32 %v360_v40, %v407_v8  ;;  %v485_v13 = vmul.f32 %v3141_v9, %v3134_v2  ;;  %vm491_vm8 = vweird.f32 %v3141_v9 }
 0x13c   : > { %v465_v14 = vmul.f32 %v2475_v10, %v456_v3  ;;  %vm471_vm2 = vweird.f32 %v2475_v10  ;;  %vm3173_vm10 = vmor %vm490_vm7, %vm491_vm8 }
 0x13d   : > { %2476 = vrsqrt.f32 %v457_v11  ;;  %v423_v15 = vmul.f32 %v3143_v12, %v3143_v12  ;;  %v486_v21 = vmul.f32 %v3141_v9, %v485_v13  ;;  %vm472_vm4 = vmor %vm470_vm3, %vm471_vm2  ;;  %vm480_vm5 = vweird.f32 %v457_v11 }
 0x13e   : > { %v466_v16 = vmul.f32 %v2475_v10, %v465_v14  ;;  %vm520_vm2 = vweird.f32 %v3161_v42 }
 0x13f   : > { %v445_v19 = vsel %vm368_vm0, %v423_v15, 0.0  ;;  %v487_v33 = vmul.f32 0.5, %v486_v21 }
 0x140   : > { %v467_v22 = vmul.f32 0.5, %v466_v16  ;;  %v435_v23 = vpop.xlane.xlu2 %434  ;;  %446 = vadd.xlane.f32.xlu0 %v445_v19  ;;  %v438_v24 = vpop.xlane.xlu0 %437 }
 0x141   : > { %v451_v25 = vmul.f32 %v435_v23, %v3074_v20  ;;  %v452_v28 = vmul.f32 %v438_v24, %v3074_v20  ;;  %v488_v47 = vsub.f32 1.5, %v487_v33 }
 0x142   : > { %v468_v29 = vsub.f32 1.5, %v467_v22 }
 0x143   : > { %v2477_v30 = vpop.eup %2476  ;;  %v459_v32 = vadd.f32 1e-05, %v451_v25  ;;  %v3156_v36 = vadd.f32 1e-05, %v452_v28  ;;  %v489_v56 = vmul.f32 %v3141_v9, %v488_v47 }
 0x144   : > { %v469_v34 = vmul.f32 %v2475_v10, %v468_v29  ;;  %v475_v35 = vmul.f32 %v2477_v30, %v457_v11  ;;  %vm481_vm6 = vweird.f32 %v2477_v30 }
 0x145   : > { %2478 = vrsqrt.f32 %v459_v32  ;;  %vm482_vm9 = vmor %vm480_vm5, %vm481_vm6  ;;  %v493_v6 = vsel %vm3173_vm10, %v3141_v9, %v489_v56  ;;  %vm500_vm11 = vweird.f32 %v459_v32  ;;  %vm510_vm14 = vweird.f32 %v3156_v36 }
 0x146   : > { %v473_v38 = vsel %vm472_vm4, %v2475_v10, %v469_v34  ;;  %v476_v40 = vmul.f32 %v2477_v30, %v475_v35  ;;  %2480 = vrsqrt.f32 %v3156_v36  ;;  %v546_v15 = vmul.f32 %v493_v6, %v3078_v26 }
 0x147   : > { %v544_v45 = vmul.f32 %v473_v38, %v3080_v27  ;;  %2482 = vrsqrt.f32 %v3161_v42 }
 0x148   : > { %v477_v48 = vmul.f32 0.5, %v476_v40  ;;  %v444_v49 = vpop.xlane.xlu2 %443  ;;  %v555_v9 = vmul.f32 %v3158_v37, %v546_v15 }
 0x149   : > { %v553_v50 = vmul.f32 %v3158_v37, %v544_v45  ;;  %v454_v27 = vmul.f32 %v444_v49, %v3074_v20 }
 0x14a   : > { %v478_v51 = vsub.f32 1.5, %v477_v48  ;;  %v564_v24 = vadd.f32 %v3164_v46, %v555_v9 }
 0x14b   : > { %v2479_v52 = vpop.eup %2478  ;;  %v562_v54 = vadd.f32 %v3164_v46, %v553_v50  ;;  %v462_v3 = vadd.f32 1e-05, %v454_v27 }
 0x14c   : > { %v2481_v55 = vpop.eup %2480  ;;  %v479_v57 = vmul.f32 %v2477_v30, %v478_v51  ;;  %v495_v62 = vmul.f32 %v2479_v52, %v459_v32  ;;  %vm501_vm12 = vweird.f32 %v2479_v52 }
 0x14d   : > { %v505_v0 = vmul.f32 %v2481_v55, %v3156_v36  ;;  %2205 = vmatmul.msk.f32.vlgmr.msra.gmra.mxu0 %vm368_vm0, %v562_v54  ;;  %v2483_v10 = vpop.eup %2482  ;;  %2484 = vrsqrt.f32 %v462_v3  ;;  %vm502_vm13 = vmor %vm500_vm11, %vm501_vm12  ;;  %vm511_vm15 = vweird.f32 %v2481_v55  ;;  %vm530_vm5 = vweird.f32 %v462_v3 }
 0x14e   : > { %v483_v1 = vsel %vm482_vm9, %v2477_v30, %v479_v57  ;;  %v496_v2 = vmul.f32 %v2479_v52, %v495_v62  ;;  %v515_v16 = vmul.f32 %v2483_v10, %v3161_v42  ;;  %vm512_vm1 = vmor %vm510_vm14, %vm511_vm15  ;;  %vm521_vm3 = vweird.f32 %v2483_v10 }
 0x14f   : > { %v545_v5 = vmul.f32 %v483_v1, %v3095_v41  ;;  %v506_v8 = vmul.f32 %v2481_v55, %v505_v0  ;;  %vm522_vm4 = vmor %vm520_vm2, %vm521_vm3  ;;  %vm671_vm11 = vcmask 130048   ;;  %vm745_vm12 = vcmask 523264  }
 0x150   : > { %v497_v7 = vmul.f32 0.5, %v496_v2  ;;  %v516_v19 = vmul.f32 %v2483_v10, %v515_v16 }
 0x151   : > { %v554_v11 = vmul.f32 %v3158_v37, %v545_v5  ;;  %v507_v18 = vmul.f32 0.5, %v506_v8 }
 0x152   : > { %v498_v13 = vsub.f32 1.5, %v497_v7  ;;  %v517_v25 = vmul.f32 0.5, %v516_v19 }
 0x153   : > { %v563_v14 = vadd.f32 %v3164_v46, %v554_v11  ;;  %v508_v22 = vsub.f32 1.5, %v507_v18  ;;  %v2485_v23 = vpop.eup %2484 }
 0x154   : > { %v499_v41 = vmul.f32 %v2479_v52, %v498_v13  ;;  %v525_v29 = vmul.f32 %v2485_v23, %v462_v3  ;;  %v518_v31 = vsub.f32 1.5, %v517_v25  ;;  %vm531_vm6 = vweird.f32 %v2485_v23 }
 0x155   : > { %2206 = vmatmul.msk.f32.gmra.mxu0 %vm368_vm0, %v563_v14  ;;  %v509_v28 = vmul.f32 %v2481_v55, %v508_v22  ;;  %vm532_vm7 = vmor %vm530_vm5, %vm531_vm6 }
 0x156   : > { %v503_v21 = vsel %vm502_vm13, %v2479_v52, %v499_v41  ;;  %v526_v33 = vmul.f32 %v2485_v23, %v525_v29  ;;  %v519_v36 = vmul.f32 %v2483_v10, %v518_v31 }
 0x157   : > { %v547_v26 = vmul.f32 %v503_v21, %v3101_v44  ;;  %v513_v32 = vsel %vm512_vm1, %v2481_v55, %v509_v28 }
 0x158   : > { %v548_v35 = vmul.f32 %v513_v32, %v3099_v43  ;;  %v527_v44 = vmul.f32 0.5, %v526_v33  ;;  %v523_v40 = vsel %vm522_vm4, %v2483_v10, %v519_v36 }
 0x159   : > { %v556_v30 = vmul.f32 %v3158_v37, %v547_v26  ;;  %v549_v42 = vmul.f32 %v523_v40, %v3092_v39 }
 0x15a   : > { %v557_v38 = vmul.f32 %v3158_v37, %v548_v35  ;;  %v528_v45 = vsub.f32 1.5, %v527_v44 }
 0x15b   : > { %v565_v34 = vadd.f32 %v3164_v46, %v556_v30  ;;  %v558_v43 = vmul.f32 %v3158_v37, %v549_v42 }
 0x15c   : > { %v566_v47 = vadd.f32 %v3164_v46, %v557_v38  ;;  %v529_v48 = vmul.f32 %v2485_v23, %v528_v45 }
 0x15d   : > { %2207 = vmatmul.msk.f32.gmra.mxu0 %vm368_vm0, %v564_v24  ;;  %v567_v50 = vadd.f32 %v3164_v46, %v558_v43 }
 0x15e   : > { %v533_v49 = vsel %vm532_vm7, %v2485_v23, %v529_v48 }
 0x15f   : > { %v550_v51 = vmul.f32 %v533_v49, %v3113_v53 }
 0x161   : > { %v559_v52 = vmul.f32 %v3158_v37, %v550_v51 }
 0x163   : > { %v568_v27 = vadd.f32 %v3164_v46, %v559_v52 }
 0x165   : > { %2208 = vmatmul.msk.f32.gmra.mxu0 %vm368_vm0, %v565_v34 }
 0x16d   : > { %2209 = vmatmul.msk.f32.gmra.mxu0 %vm368_vm0, %v566_v47 }
 0x175   : > { %2210 = vmatmul.msk.f32.gmra.mxu0 %vm368_vm0, %v567_v50 }
 0x17d   : > { %2211 = vmatmul.msk.f32.gmra.mxu0 %vm368_vm0, %v568_v27 }
 0x1b3   : > { %v447_v39 = vpop.xlane.xlu0 %446 }
 0x1b4   : > { %v455_v54 = vmul.f32 %v447_v39, %v3074_v20  ;;  %v639_v39 = vld [vmem:[#allocation5] sm:$0xff] }
 0x1b6   : > { %v463_v55 = vadd.f32 1e-05, %v455_v54 }
 0x1b8   : > { %2486 = vrsqrt.f32 %v463_v55  ;;  %vm540_vm9 = vweird.f32 %v463_v55 }
 0x1be   : > { %v2487_v56 = vpop.eup %2486 }
 0x1bf   : > { %v535_v57 = vmul.f32 %v2487_v56, %v463_v55  ;;  %vm541_vm8 = vweird.f32 %v2487_v56 }
 0x1c0   : > { %vm542_vm10 = vmor %vm540_vm9, %vm541_vm8 }
 0x1c1   : > { %v536_v62 = vmul.f32 %v2487_v56, %v535_v57  ;;  %v640_v57 = vld [vmem:[#allocation5 + $0x8] sm:$0xff] }
 0x1c3   : > { %v537_v63 = vmul.f32 0.5, %v536_v62 }
 0x1c5   : > { %v538_v0 = vsub.f32 1.5, %v537_v63 }
 0x1c7   : > { %v539_v53 = vmul.f32 %v2487_v56, %v538_v0 }
 0x1c9   : > { %v543_v1 = vsel %vm542_vm10, %v2487_v56, %v539_v53 }
 0x1ca   : > { %v3210_v2 = vpop.f32.mrf.mxu0  ;;  %v551_v3 = vmul.f32 %v543_v1, %v3143_v12 }
 0x1cc   : > { %v560_v5 = vmul.f32 %v3158_v37, %v551_v3 }
 0x1ce   : > { %v569_v6 = vadd.f32 %v3164_v46, %v560_v5 }
 0x1d0   : > { %2212 = vmatmul.msk.f32.gmra.mxu0 %vm368_vm0, %v569_v6 }
 0x1d2   : > { %v3216_v7 = vpop.f32.mrf.mxu0 }
 0x1da   : > { %v3218_v8 = vpop.f32.mrf.mxu0 }
 0x1e2   : > { %v3220_v10 = vpop.f32.mrf.mxu0 }
 0x1e3   : > { %v3247_v46 = vpack.i.bf16 %v3218_v8, %v3220_v10 }
 0x1ea   : > { %v3222_v11 = vpop.f32.mrf.mxu0 }
 0x1f2   : > { %v3224_v13 = vpop.f32.mrf.mxu0 }
 0x1f3   : > { %949 = vrot.lane.b32.xlu0 %v3224_v13, %s2860_s29  ;;  %v3270_v15 = vpack.i.bf16 %v3222_v11, %v3224_v13 }
 0x1fa   : > { %v3227_v12 = vpop.f32.mrf.mxu0 }
 0x1fb   : > { %943 = vrot.lane.b32.xlu0 %v3218_v8, %s2860_s29  ;;  %951 = vrot.lane.b32.xlu2 %v3227_v12, %s2860_s29 }
 0x203   : > { %923 = vrot.lane.b32.xlu0 %v3210_v2, %s2861_s11  ;;  %947 = vrot.lane.b32.xlu2 %v3222_v11, %s2860_s29 }
 0x20b   : > { %667 = vrot.lane.b32.xlu0 %v3227_v12, %s2862_s12  ;;  %941 = vrot.lane.b32.xlu2 %v3216_v7, %s2860_s29 }
 0x213   : > { %663 = vrot.lane.b32.xlu0 %v3222_v11, %s2862_s12 }
 0x21b   : > { %659 = vrot.lane.b32.xlu0 %v3218_v8, %s2862_s12 }
 0x223   : > { %655 = vrot.lane.b32.xlu0 %v3210_v2, %s2862_s12 }
 0x24d   : > { %v3239_v37 = vpop.f32.mrf.mxu0 }
 0x24e   : > { %937 = vrot.lane.b32.xlu0 %v3239_v37, %s2861_s11  ;;  %669 = vrot.lane.b32.xlu2 %v3239_v37, %s2862_s12  ;;  %v3255_v14 = vpack.i.bf16 %v3227_v12, %v3239_v37 }
 0x24f   : > { %953 = vrot.lane.b32.xlu1 %v3239_v37, %s2860_s29 }
 0x255   : > { %v952_v18 = vpop.permute.xlu2 %951 }
 0x256   : > { %2419 = vrot.lane.b32.xlu0 %v3247_v46, %s2863_s16  ;;  %665 = vrot.lane.b32.xlu2 %v3224_v13, %s2862_s12 }
 0x257   : > { %945 = vrot.lane.b32.xlu1 %v3220_v10, %s2860_s29 }
 0x25d   : > { %v948_v19 = vpop.permute.xlu2 %947 }
 0x25e   : > { %2424 = vrot.lane.b32.xlu0 %v3255_v14, %s2863_s16  ;;  %661 = vrot.lane.b32.xlu2 %v3220_v10, %s2862_s12 }
 0x25f   : > { %939 = vrot.lane.b32.xlu1 %v3210_v2, %s2860_s29  ;;  %s2050_s29 = scalar_lea.sflag [#allocation4], %s3036_s7 }
 0x265   : > { %v950_v16 = vpop.permute.xlu0 %949  ;;  %v942_v22 = vpop.permute.xlu2 %941 }
 0x266   : > { %657 = vrot.lane.b32.xlu2 %v3216_v7, %s2862_s12 }
 0x267   : > { %925 = vrot.lane.b32.xlu1 %v3216_v7, %s2861_s11 }
 0x26d   : > { %v944_v41 = vpop.permute.xlu0 %943 }
 0x26e   : > { %933 = vrot.lane.b32.xlu2 %v3224_v13, %s2861_s11 }
 0x26f   : > { %927 = vrot.lane.b32.xlu1 %v3218_v8, %s2861_s11 }
 0x275   : > { %v924_v9 = vpop.permute.xlu0 %923 }
 0x276   : > { %2414 = vrot.lane.b32.xlu2 %v3270_v15, %s2863_s16 }
 0x277   : > { %929 = vrot.lane.b32.xlu1 %v3220_v10, %s2861_s11 }
 0x27d   : > { %v668_v21 = vpop.permute.xlu0 %667 }
 0x27f   : > { %931 = vrot.lane.b32.xlu1 %v3222_v11, %s2861_s11 }
 0x285   : > { %v664_v23 = vpop.permute.xlu0 %663 }
 0x287   : > { %935 = vrot.lane.b32.xlu1 %v3227_v12, %s2861_s11 }
 0x28d   : > { %v660_v26 = vpop.permute.xlu0 %659 }
 0x295   : > { %v656_v28 = vpop.permute.xlu0 %655 }
 0x2a8   : > { %v670_v24 = vpop.permute.xlu2 %669 }
 0x2a9   : > { %2213 = vmatpush.xpose.msk.msra.mxu1 %vm671_vm11, %v670_v24 }
 0x2ad   : > { %2214 = vmatpush.xpose.msk.msra.mxu1 %vm671_vm11, %v668_v21 }
 0x2b0   : > { %v666_v25 = vpop.permute.xlu2 %665 }
 0x2b1   : > { %2215 = vmatpush.xpose.msk.msra.mxu1 %vm671_vm11, %v666_v25 }
 0x2b5   : > { %2216 = vmatpush.xpose.msk.msra.mxu1 %vm671_vm11, %v664_v23 }
 0x2b8   : > { %v662_v29 = vpop.permute.xlu2 %661 }
 0x2b9   : > { %2217 = vmatpush.xpose.msk.msra.mxu1 %vm671_vm11, %v662_v29 }
 0x2bd   : > { %2218 = vmatpush.xpose.msk.msra.mxu1 %vm671_vm11, %v660_v26  ;;  %v645_v26 = vld [vmem:[#allocation5 + $0x30] sm:$0xff] }
 0x2c0   : > { %v658_v30 = vpop.permute.xlu2 %657  ;;  %v938_v31 = vpop.permute.xlu0 %937 }
 0x2c1   : > { %v954_v32 = vpop.permute.xlu1 %953  ;;  %2219 = vmatpush.xpose.msk.msra.mxu1 %vm671_vm11, %v658_v30 }
 0x2c2   : > { %2237 = vmatpush.xpose.msk.msra.mxu3 %vm671_vm11, %v954_v32  ;;  %v644_v32 = vld [vmem:[#allocation5 + $0x28] sm:$0xff] }
 0x2c5   : > { %2220 = vmatpush.xpose.msk.msra.mxu1 %vm671_vm11, %v656_v28 }
 0x2c6   : > { %2238 = vmatpush.xpose.msk.msra.mxu3 %vm671_vm11, %v952_v18 }
 0x2c8   : > { %v934_v33 = vpop.permute.xlu2 %933  ;;  %2221 = vmatmul.msk.f32.vlgmr.msra.gmra.mxu1 %vm671_vm11, %v3210_v2  ;;  %v2420_v34 = vpop.permute.xlu0 %2419 }
 0x2c9   : > { %v946_v35 = vpop.permute.xlu1 %945  ;;  %v2421_v48 = vunpack.i.l.bf16 %v2420_v34  ;;  %v2422_v43 = vunpack.i.h.bf16 %v2420_v34 }
 0x2ca   : > { %2239 = vmatpush.xpose.msk.msra.mxu3 %vm671_vm11, %v950_v16 }
 0x2ce   : > { %2240 = vmatpush.xpose.msk.msra.mxu3 %vm671_vm11, %v948_v19 }
 0x2d0   : > { %2222 = vmatmul.msk.f32.gmra.mxu1 %vm671_vm11, %v3216_v7  ;;  %v2425_v36 = vpop.permute.xlu0 %2424  ;;  %v2415_v38 = vpop.permute.xlu2 %2414 }
 0x2d1   : > { %v2426_v44 = vunpack.i.l.bf16 %v2425_v36  ;;  %v2427_v40 = vunpack.i.h.bf16 %v2425_v36  ;;  %v2416_v45 = vunpack.i.l.bf16 %v2415_v38  ;;  %v2417_v47 = vunpack.i.h.bf16 %v2415_v38  ;;  %v940_v42 = vpop.permute.xlu1 %939 }
 0x2d2   : > { %2241 = vmatpush.xpose.msk.msra.mxu3 %vm671_vm11, %v946_v35 }
 0x2d3   : > { %1172 = vmatpush.msrb.mxu0 %v2426_v44 }
 0x2d5   : > { %1173 = vmatpush.msrb.mxu0 %v2427_v40 }
 0x2d6   : > { %2242 = vmatpush.xpose.msk.msra.mxu3 %vm671_vm11, %v944_v41 }
 0x2d7   : > { %1174 = vmatpush.msrb.mxu0 %v2416_v45 }
 0x2d8   : > { %2223 = vmatmul.msk.f32.gmra.mxu1 %vm671_vm11, %v3218_v8 }
 0x2d9   : > { %1175 = vmatpush.msrb.mxu0 %v2417_v47  ;;  %v926_v49 = vpop.permute.xlu1 %925  ;;  %v643_v47 = vld [vmem:[#allocation5 + $0x20] sm:$0xff] }
 0x2da   : > { %2243 = vmatpush.xpose.msk.msra.mxu3 %vm671_vm11, %v942_v22 }
 0x2db   : > { %1176 = vmatpush.msrb.mxu0 %v2421_v48 }
 0x2dd   : > { %1177 = vmatpush.msrb.mxu0 %v2422_v43  ;;  %v646_v43 = vld [vmem:[#allocation5 + $0x38] sm:$0xff] }
 0x2de   : > { %2244 = vmatpush.xpose.msk.msra.mxu3 %vm671_vm11, %v940_v42 }
 0x2e0   : > { %2224 = vmatmul.msk.f32.gmra.mxu1 %vm671_vm11, %v3220_v10 }
 0x2e1   : > { %2245 = vmatmul.msk.f32.vlgmr.msra.gmra.mxu3 %vm671_vm11, %v924_v9  ;;  %v928_v50 = vpop.permute.xlu1 %927  ;;  %v642_v9 = vld [vmem:[#allocation5 + $0x18] sm:$0xff] }
 0x2e8   : > { %2225 = vmatmul.msk.f32.gmra.mxu1 %vm671_vm11, %v3222_v11 }
 0x2e9   : > { %2246 = vmatmul.msk.f32.gmra.mxu3 %vm671_vm11, %v926_v49  ;;  %v930_v51 = vpop.permute.xlu1 %929 }
 0x2f0   : > { %2226 = vmatmul.msk.f32.gmra.mxu1 %vm671_vm11, %v3224_v13 }
 0x2f1   : > { %2247 = vmatmul.msk.f32.gmra.mxu3 %vm671_vm11, %v928_v50  ;;  %v932_v52 = vpop.permute.xlu1 %931 }
 0x2f8   : > { %2227 = vmatmul.msk.f32.gmra.mxu1 %vm671_vm11, %v3227_v12  ;;  %v641_v12 = vld [vmem:[#allocation5 + $0x10] sm:$0xff] }
 0x2f9   : > { %2248 = vmatmul.msk.f32.gmra.mxu3 %vm671_vm11, %v930_v51  ;;  %v936_v27 = vpop.permute.xlu1 %935 }
 0x300   : > { %2228 = vmatmul.msk.f32.gmra.mxu1 %vm671_vm11, %v3239_v37 }
 0x301   : > { %2249 = vmatmul.msk.f32.gmra.mxu3 %vm671_vm11, %v932_v52 }
 0x309   : > { %2250 = vmatmul.msk.f32.gmra.mxu3 %vm671_vm11, %v934_v33 }
 0x311   : > { %2251 = vmatmul.msk.f32.gmra.mxu3 %vm671_vm11, %v936_v27 }
 0x319   : > { %2252 = vmatmul.msk.f32.gmra.mxu3 %vm671_vm11, %v938_v31  ;;  %v3350_v31 = vpack.i.bf16 %v3210_v2, %v3216_v7 }
 0x345   : > { %v721_v54 = vpop.f32.mrf.mxu1 }
 0x346   : > { %v3320_v55 = vadd.f32 %v721_v54, %v639_v39 }
 0x348   : > { %v746_v56 = vsel %vm745_vm12, %v3320_v55, -inf }
 0x349   : > { %747 = vmax.xlane.f32.xlu0 %v746_v56 }
 0x34d   : > { %v724_v62 = vpop.f32.mrf.mxu1 }
 0x34e   : > { %v3324_v63 = vadd.f32 %v724_v62, %v640_v57 }
 0x350   : > { %v749_v0 = vsel %vm745_vm12, %v3324_v63, -inf }
 0x351   : > { %750 = vmax.xlane.f32.xlu1 %v749_v0 }
 0x355   : > { %v727_v53 = vpop.f32.mrf.mxu1 }
 0x356   : > { %v3368_v40 = vadd.f32 %v727_v53, %v641_v12 }
 0x358   : > { %v752_v45 = vsel %vm745_vm12, %v3368_v40, -inf }
 0x35d   : > { %v730_v1 = vpop.f32.mrf.mxu1 }
 0x35e   : > { %v3336_v19 = vadd.f32 %v730_v1, %v642_v9 }
 0x360   : > { %v755_v24 = vsel %vm745_vm12, %v3336_v19, -inf }
 0x364   : > { %v1004_v3 = vpop.f32.mrf.mxu3 }
 0x365   : > { %v1005_v5 = vadd.f32 %v1004_v3, %v639_v39  ;;  %v3329_v8 = vpop.f32.mrf.mxu1 }
 0x366   : > { %v3390_v3 = vadd.f32 %v3329_v8, %v643_v47 }
 0x367   : > { %v1028_v6 = vsel %vm745_vm12, %v1005_v5, -inf }
 0x368   : > { %1029 = vmax.xlane.f32.xlu2 %v1028_v6 }
 0x36c   : > { %v1007_v10 = vpop.f32.mrf.mxu3 }
 0x36d   : > { %v1008_v11 = vadd.f32 %v1007_v10, %v640_v57  ;;  %v736_v41 = vpop.f32.mrf.mxu1 }
 0x36e   : > { %v3362_v2 = vadd.f32 %v736_v41, %v644_v32 }
 0x36f   : > { %v1031_v13 = vsel %vm745_vm12, %v1008_v11, -inf }
 0x370   : > { %1032 = vmax.xlane.f32.xlu1 %v1031_v13  ;;  %v761_v7 = vsel %vm745_vm12, %v3362_v2, -inf  ;;  %v758_v13 = vsel %vm745_vm12, %v3390_v3, -inf }
 0x374   : > { %v1010_v37 = vpop.f32.mrf.mxu3 }
 0x375   : > { %v3332_v16 = vadd.f32 %v1010_v37, %v641_v12  ;;  %v739_v25 = vpop.f32.mrf.mxu1 }
 0x376   : > { %v3344_v28 = vadd.f32 %v739_v25, %v645_v26 }
 0x377   : > { %v1034_v18 = vsel %vm745_vm12, %v3332_v16, -inf }
 0x378   : > { %1035 = vmax.xlane.f32.xlu0 %v1034_v18  ;;  %v764_v30 = vsel %vm745_vm12, %v3344_v28, -inf }
 0x37c   : > { %v1013_v21 = vpop.f32.mrf.mxu3 }
 0x37d   : > { %v3338_v22 = vadd.f32 %v1013_v21, %v642_v9  ;;  %v742_v21 = vpop.f32.mrf.mxu1 }
 0x37f   : > { %v1037_v23 = vsel %vm745_vm12, %v3338_v22, -inf }
 0x380   : > { %1038 = vmax.xlane.f32.xlu2 %v1037_v23  ;;  %756 = vmax.xlane.f32.xlu0 %v755_v24  ;;  %v3408_v23 = vadd.f32 %v742_v21, %v646_v43 }
 0x384   : > { %v1016_v29 = vpop.f32.mrf.mxu3 }
 0x385   : > { %v3372_v42 = vadd.f32 %v1016_v29, %v643_v47 }
 0x387   : > { %v1040_v48 = vsel %vm745_vm12, %v3372_v42, -inf }
 0x388   : > { %765 = vmax.xlane.f32.xlu0 %v764_v30 }
 0x389   : > { %2429 = vrot.lane.b32.xlu1 %v3350_v31, %s2863_s16 }
 0x38c   : > { %v1019_v33 = vpop.f32.mrf.mxu3 }
 0x38d   : > { %v3354_v34 = vadd.f32 %v1019_v33, %v644_v32 }
 0x38f   : > { %v1043_v35 = vsel %vm745_vm12, %v3354_v34, -inf }
 0x390   : > { %1044 = vmax.xlane.f32.xlu2 %v1043_v35 }
 0x394   : > { %v1022_v36 = vpop.f32.mrf.mxu3 }
 0x395   : > { %v3358_v44 = vadd.f32 %v1022_v36, %v645_v26 }
 0x397   : > { %v1046_v38 = vsel %vm745_vm12, %v3358_v44, -inf }
 0x398   : > { %1047 = vmax.xlane.f32.xlu2 %v1046_v38 }
 0x39c   : > { %2439 = vrot.lane.b32.xlu0 %v3270_v15, %s2864_s14  ;;  %v1025_v15 = vpop.f32.mrf.mxu3 }
 0x39d   : > { %v3378_v49 = vadd.f32 %v1025_v15, %v646_v43 }
 0x39f   : > { %v1049_v50 = vsel %vm745_vm12, %v3378_v49, -inf }
 0x3a0   : > { %762 = vmax.xlane.f32.xlu2 %v761_v7 }
 0x3b3   : > { %753 = vmax.xlane.f32.xlu1 %v752_v45 }
 0x3b8   : > { %2434 = vrot.lane.b32.xlu2 %v3255_v14, %s2864_s14 }
 0x3bb   : > { %1041 = vmax.xlane.f32.xlu1 %v1040_v48 }
 0x3bc   : > { %v748_v54 = vpop.xlane.xlu0 %747 }
 0x3bd   : > { %v770_v62 = vsub.f32 %v3320_v55, %v748_v54 }
 0x3bf   : > { %v778_v1 = vmul.f32 1.442695, %v770_v62 }
 0x3c3   : > { %1050 = vmax.xlane.f32.xlu1 %v1049_v50 }
 0x3c4   : > { %v3382_v51 = vpop.xlane.xlu1 %750 }
 0x3db   : > { %v1030_v52 = vpop.xlane.xlu2 %1029 }
 0x3dc   : > { %v1052_v27 = vsub.f32 %v1005_v5, %v1030_v52 }
 0x3de   : > { %v1060_v39 = vmul.f32 1.442695, %v1052_v27 }
 0x3e0   : > { %2488 = vpow2.f32 %v1060_v39 }
 0x3e3   : > { %v1033_v14 = vpop.xlane.xlu1 %1032 }
 0x3e4   : > { %v1053_v56 = vsub.f32 %v1008_v11, %v1033_v14 }
 0x3e6   : > { %v3384_v57 = vpop.eup %2488  ;;  %v1062_v0 = vmul.f32 1.442695, %v1053_v56 }
 0x3e7   : > { %v1076_v53 = vsel %vm745_vm12, %v3384_v57, 0.0 }
 0x3e8   : > { %2490 = vpow2.f32 %v1062_v0  ;;  %1077 = vadd.xlane.f32.xlu1 %v1076_v53  ;;  %v771_v0 = vsub.f32 %v3324_v63, %v3382_v51 }
 0x3e9   : > { %2492 = vpow2.f32 %v778_v1 }
 0x3eb   : > { %v1036_v5 = vpop.xlane.xlu0 %1035 }
 0x3ec   : > { %v1054_v6 = vsub.f32 %v3332_v16, %v1036_v5 }
 0x3ee   : > { %v3393_v10 = vpop.eup %2490  ;;  %v1064_v11 = vmul.f32 1.442695, %v1054_v6 }
 0x3ef   : > { %v1079_v55 = vsel %vm745_vm12, %v3393_v10, 0.0  ;;  %v3399_v37 = vpop.eup %2492 }
 0x3f0   : > { %2494 = vpow2.f32 %v1064_v11  ;;  %1080 = vadd.xlane.f32.xlu2 %v1079_v55  ;;  %759 = vmax.xlane.f32.xlu1 %v758_v13  ;;  %v794_v18 = vsel %vm745_vm12, %v3399_v37, 0.0 }
 0x3f3   : > { %v1039_v12 = vpop.xlane.xlu2 %1038  ;;  %v757_v33 = vpop.xlane.xlu0 %756 }
 0x3f4   : > { %v1055_v8 = vsub.f32 %v3338_v22, %v1039_v12  ;;  %v767_v22 = vsel %vm745_vm12, %v3408_v23, -inf }
 0x3f6   : > { %v3402_v41 = vpop.eup %2494  ;;  %v1066_v16 = vmul.f32 1.442695, %v1055_v8 }
 0x3f7   : > { %v1082_v9 = vsel %vm745_vm12, %v3402_v41, 0.0 }
 0x3f8   : > { %2496 = vpow2.f32 %v1066_v16  ;;  %795 = vadd.xlane.f32.xlu1 %v794_v18  ;;  %1083 = vadd.xlane.f32.xlu0 %v1082_v9  ;;  %v773_v18 = vsub.f32 %v3336_v19, %v757_v33 }
 0x3fa   : > { %v784_v21 = vmul.f32 1.442695, %v773_v18 }
 0x3fb   : > { %v2430_v24 = vpop.permute.xlu1 %2429  ;;  %v3420_v38 = vpop.xlane.xlu0 %765 }
 0x3fc   : > { %v2431_v26 = vunpack.i.l.bf16 %v2430_v24  ;;  %v2432_v30 = vunpack.i.h.bf16 %v2430_v24  ;;  %v776_v59 = vsub.f32 %v3344_v28, %v3420_v38 }
 0x3fe   : > { %v3410_v25 = vpop.eup %2496  ;;  %1178 = vmatpush.msrb.mxu0 %v2431_v26 }
 0x3ff   : > { %v1085_v29 = vsel %vm745_vm12, %v3410_v25, 0.0 }
 0x400   : > { %768 = vmax.xlane.f32.xlu1 %v767_v22  ;;  %1086 = vadd.xlane.f32.xlu0 %v1085_v29 }
 0x401   : > { %1179 = vmatpush.msrb.mxu0 %v2432_v30 }
 0x403   : > { %v1045_v32 = vpop.xlane.xlu2 %1044 }
 0x404   : > { %v1057_v15 = vsub.f32 %v3354_v34, %v1045_v32 }
 0x408   : > { %2444 = vrot.lane.b32.xlu2 %v3247_v46, %s2864_s14  ;;  %v1070_v46 = vmul.f32 1.442695, %v1057_v15 }
 0x40a   : > { %2498 = vpow2.f32 %v1070_v46 }
 0x40b   : > { %v1048_v35 = vpop.xlane.xlu2 %1047 }
 0x40c   : > { %v1058_v39 = vsub.f32 %v3358_v44, %v1048_v35  ;;  %v780_v44 = vmul.f32 1.442695, %v771_v0 }
 0x40e   : > { %v2440_v47 = vpop.permute.xlu0 %2439  ;;  %v1072_v34 = vmul.f32 1.442695, %v1058_v39 }
 0x40f   : > { %v2441_v43 = vunpack.i.l.bf16 %v2440_v47  ;;  %v2442_v50 = vunpack.i.h.bf16 %v2440_v47 }
 0x410   : > { %v3425_v54 = vpop.eup %2498 }
 0x411   : > { %v1091_v62 = vsel %vm745_vm12, %v3425_v54, 0.0 }
 0x413   : > { %v763_v36 = vpop.xlane.xlu2 %762 }
 0x414   : > { %2449 = vrot.lane.b32.xlu0 %v3350_v31, %s2864_s14  ;;  %v775_v27 = vsub.f32 %v3362_v2, %v763_v36  ;;  %v790_v36 = vmul.f32 1.442695, %v776_v59  ;;  %s2792_s14 = scalar_lea.hbm %s3889_s6, 128 }
 0x416   : > { %v788_v31 = vmul.f32 1.442695, %v775_v27 }
 0x418   : > { %2500 = vpow2.f32 %v788_v31 }
 0x41b   : > { %v2435_v7 = vpop.permute.xlu2 %2434 }
 0x41c   : > { %v2436_v45 = vunpack.i.l.bf16 %v2435_v7  ;;  %v2437_v48 = vunpack.i.h.bf16 %v2435_v7 }
 0x41e   : > { %890 = vmatpush.msra.mxu2 %v2436_v45  ;;  %v3432_v2 = vpop.eup %2500 }
 0x41f   : > { %v809_v1 = vsel %vm745_vm12, %v3432_v2, 0.0 }
 0x420   : > { %891 = vmatpush.msra.mxu2 %v2437_v48 }
 0x422   : > { %892 = vmatpush.msra.mxu2 %v2441_v43 }
 0x424   : > { %893 = vmatpush.msra.mxu2 %v2442_v50 }
 0x426   : > { %v754_v52 = vpop.xlane.xlu1 %753 }
 0x42e   : > { %v1042_v14 = vpop.xlane.xlu1 %1041 }
 0x42f   : > { %v1056_v56 = vsub.f32 %v3372_v42, %v1042_v14  ;;  %v772_v42 = vsub.f32 %v3368_v40, %v754_v52 }
 0x431   : > { %v1068_v53 = vmul.f32 1.442695, %v1056_v56  ;;  %1092 = vadd.xlane.f32.xlu2 %v1091_v62  ;;  %v782_v51 = vmul.f32 1.442695, %v772_v42 }
 0x433   : > { %2502 = vpow2.f32 %v1068_v53 }
 0x434   : > { %2504 = vpow2.f32 %v1072_v34 }
 0x435   : > { %2506 = vpow2.f32 %v780_v44 }
 0x436   : > { %v1051_v55 = vpop.xlane.xlu1 %1050  ;;  %2508 = vpow2.f32 %v782_v51 }
 0x437   : > { %v1059_v12 = vsub.f32 %v3378_v49, %v1051_v55 }
 0x439   : > { %v3436_v5 = vpop.eup %2502  ;;  %810 = vadd.xlane.f32.xlu2 %v809_v1  ;;  %v1074_v8 = vmul.f32 1.442695, %v1059_v12 }
 0x43a   : > { %v3439_v6 = vpop.eup %2504  ;;  %v1088_v63 = vsel %vm745_vm12, %v3436_v5, 0.0 }
 0x43b   : > { %1089 = vadd.xlane.f32.xlu1 %v1088_v63  ;;  %v1094_v11 = vsel %vm745_vm12, %v3439_v6, 0.0  ;;  %v3445_v13 = vpop.eup %2506  ;;  %2510 = vpow2.f32 %v1074_v8 }
 0x43c   : > { %v797_v40 = vsel %vm745_vm12, %v3445_v13, 0.0  ;;  %v3450_v16 = vpop.eup %2508  ;;  %2512 = vpow2.f32 %v784_v21 }
 0x43d   : > { %v800_v9 = vsel %vm745_vm12, %v3450_v16, 0.0 }
 0x43e   : > { %1095 = vadd.xlane.f32.xlu0 %v1094_v11 }
 0x441   : > { %v3455_v24 = vpop.eup %2510 }
 0x442   : > { %v1097_v49 = vsel %vm745_vm12, %v3455_v24, 0.0  ;;  %v3463_v19 = vpop.eup %2512 }
 0x443   : > { %798 = vadd.xlane.f32.xlu1 %v797_v40  ;;  %v803_v26 = vsel %vm745_vm12, %v3463_v19, 0.0 }
 0x44b   : > { %801 = vadd.xlane.f32.xlu1 %v800_v9 }
 0x451   : > { %2454 = vrot.lane.b32.xlu2 %v2453_v4, %s2865_s19 }
 0x453   : > { %1098 = vadd.xlane.f32.xlu1 %v1097_v49 }
 0x45b   : > { %v1078_v22 = vpop.xlane.xlu1 %1077  ;;  %804 = vadd.xlane.f32.xlu1 %v803_v26 }
 0x45c   : > { %2514 = vrcp.f32 %v1078_v22 }
 0x462   : > { %v2515_v29 = vpop.eup %2514 }
 0x463   : > { %v1081_v30 = vpop.xlane.xlu2 %1080  ;;  %v760_v32 = vpop.xlane.xlu1 %759  ;;  %v1108_v33 = vmul.f32 %v2515_v29, %v3384_v57 }
 0x464   : > { %2516 = vrcp.f32 %v1081_v30  ;;  %v774_v58 = vsub.f32 %v3390_v3, %v760_v32 }
 0x465   : > { %2253 = vmatmul.msk.f32.vlgmr.msrb.gmra.mxu0 %vm745_vm12, %v1108_v33 }
 0x466   : > { %v786_v4 = vmul.f32 1.442695, %v774_v58 }
 0x468   : > { %2518 = vpow2.f32 %v786_v4 }
 0x46a   : > { %v2517_v35 = vpop.eup %2516 }
 0x46b   : > { %v2445_v7 = vpop.permute.xlu2 %2444  ;;  %v796_v45 = vpop.xlane.xlu1 %795  ;;  %v1109_v47 = vmul.f32 %v2517_v35, %v3393_v10 }
 0x46c   : > { %v1084_v48 = vpop.xlane.xlu0 %1083  ;;  %v2446_v15 = vunpack.i.l.bf16 %v2445_v7  ;;  %v2447_v3 = vunpack.i.h.bf16 %v2445_v7 }
 0x46d   : > { %2520 = vrcp.f32 %v1084_v48  ;;  %2254 = vmatmul.msk.f32.gmra.mxu0 %vm745_vm12, %v1109_v47 }
 0x46e   : > { %v3474_v57 = vpop.eup %2518  ;;  %2522 = vpow2.f32 %v790_v36  ;;  %894 = vmatpush.msra.mxu2 %v2446_v15 }
 0x46f   : > { %v806_v28 = vsel %vm745_vm12, %v3474_v57, 0.0 }
 0x470   : > { %807 = vadd.xlane.f32.xlu1 %v806_v28  ;;  %895 = vmatpush.msra.mxu2 %v2447_v3 }
 0x473   : > { %v2521_v38 = vpop.eup %2520  ;;  %v769_v43 = vpop.xlane.xlu1 %768 }
 0x474   : > { %v3478_v50 = vpop.eup %2522  ;;  %v777_v10 = vsub.f32 %v3408_v23, %v769_v43  ;;  %v1087_v46 = vpop.xlane.xlu0 %1086  ;;  %v1110_v52 = vmul.f32 %v2521_v38, %v3402_v41 }
 0x475   : > { %2524 = vrcp.f32 %v1087_v46  ;;  %v812_v31 = vsel %vm745_vm12, %v3478_v50, 0.0 }
 0x476   : > { %v792_v27 = vmul.f32 1.442695, %v777_v10  ;;  %2255 = vmatmul.msk.f32.gmra.mxu0 %vm745_vm12, %v1110_v52 }
 0x478   : > { %2526 = vpow2.f32 %v792_v27  ;;  %813 = vadd.xlane.f32.xlu1 %v812_v31 }
 0x479   : > { %2528 = vrcp.f32 %v796_v45 }
 0x47b   : > { %v2525_v39 = vpop.eup %2524 }
 0x47c   : > { %v1111_v14 = vmul.f32 %v2525_v39, %v3410_v25 }
 0x47e   : > { %v3486_v56 = vpop.eup %2526  ;;  %2256 = vmatmul.msk.f32.gmra.mxu0 %vm745_vm12, %v1111_v14 }
 0x47f   : > { %v815_v23 = vsel %vm745_vm12, %v3486_v56, 0.0  ;;  %v2529_v34 = vpop.eup %2528 }
 0x480   : > { %816 = vadd.xlane.f32.xlu0 %v815_v23  ;;  %v826_v53 = vmul.f32 %v2529_v34, %v3399_v37 }
 0x486   : > { %v2450_v41 = vpop.permute.xlu0 %2449 }
 0x487   : > { %v2451_v62 = vunpack.i.l.bf16 %v2450_v41  ;;  %v2452_v0 = vunpack.i.h.bf16 %v2450_v41 }
 0x489   : > { %896 = vmatpush.msra.mxu2 %v2451_v62 }
 0x48b   : > { %897 = vmatpush.msra.mxu2 %v2452_v0 }
 0x48c   : > { %2229 = vmatmul.msk.f32.vlgmr.msra.gmra.mxu2 %vm745_vm12, %v826_v53 }
 0x491   : > { %2459 = vrot.lane.b32.xlu1 %v2458_v17, %s2865_s19 }
 0x4a4   : > { %v1093_v44 = vpop.xlane.xlu2 %1092 }
 0x4ae   : > { %v1090_v25 = vpop.xlane.xlu1 %1089 }
 0x4af   : > { %2530 = vrcp.f32 %v1090_v25 }
 0x4b0   : > { %2532 = vrcp.f32 %v1093_v44 }
 0x4b1   : > { %v1096_v37 = vpop.xlane.xlu0 %1095 }
 0x4b5   : > { %v2531_v1 = vpop.eup %2530 }
 0x4b6   : > { %v799_v42 = vpop.xlane.xlu1 %798  ;;  %v1112_v63 = vmul.f32 %v2531_v1, %v3436_v5  ;;  %v2533_v51 = vpop.eup %2532 }
 0x4b7   : > { %2534 = vrcp.f32 %v799_v42  ;;  %v1113_v60 = vmul.f32 %v2533_v51, %v3425_v54 }
 0x4b8   : > { %2257 = vmatmul.msk.f32.gmra.mxu0 %vm745_vm12, %v1112_v63  ;;  %2536 = vrcp.f32 %v1096_v37 }
 0x4bd   : > { %v2535_v11 = vpop.eup %2534 }
 0x4be   : > { %v802_v55 = vpop.xlane.xlu1 %801  ;;  %v827_v12 = vmul.f32 %v2535_v11, %v3445_v13  ;;  %v2537_v61 = vpop.eup %2536 }
 0x4bf   : > { %2538 = vrcp.f32 %v802_v55  ;;  %v1114_v8 = vmul.f32 %v2537_v61, %v3439_v6  ;;  %v811_v6 = vpop.xlane.xlu2 %810  ;;  %v2465_v55 = vld [vmem:[#allocation11 + $0x2] ss:$0 sm:$0xff] }
 0x4c0   : > { %2230 = vmatmul.msk.f32.gmra.mxu2 %vm745_vm12, %v827_v12  ;;  %2258 = vmatmul.msk.f32.gmra.mxu0 %vm745_vm12, %v1113_v60  ;;  %v2584_v60 = vld [vmem:[%s3042_s8] sm:$0xff] }
 0x4c5   : > { %v2539_v17 = vpop.eup %2538 }
 0x4c6   : > { %v1099_v5 = vpop.xlane.xlu1 %1098  ;;  %v828_v40 = vmul.f32 %v2539_v17, %v3450_v16 }
 0x4c7   : > { %2540 = vrcp.f32 %v1099_v5 }
 0x4c8   : > { %2231 = vmatmul.msk.f32.gmra.mxu2 %vm745_vm12, %v828_v40  ;;  %2259 = vmatmul.msk.f32.gmra.mxu0 %vm745_vm12, %v1114_v8  ;;  %v2585_v8 = vld [vmem:[%s3042_s8 + $0x8] sm:$0xff] }
 0x4cd   : > { %v2541_v13 = vpop.eup %2540 }
 0x4ce   : > { %v805_v18 = vpop.xlane.xlu1 %804  ;;  %v1115_v54 = vmul.f32 %v2541_v13, %v3455_v24 }
 0x4cf   : > { %2542 = vrcp.f32 %v805_v18 }
 0x4d0   : > { %2260 = vmatmul.msk.f32.gmra.mxu0 %vm745_vm12, %v1115_v54 }
 0x4d5   : > { %v2543_v9 = vpop.eup %2542 }
 0x4d6   : > { %v829_v21 = vmul.f32 %v2543_v9, %v3463_v19  ;;  %v2455_v19 = vpop.permute.xlu2 %2454 }
 0x4d7   : > { %v2456_v32 = vunpack.i.l.bf16 %v2455_v19  ;;  %v2457_v33 = vunpack.i.h.bf16 %v2455_v19 }
 0x4d8   : > { %2232 = vmatmul.msk.f32.gmra.mxu2 %vm745_vm12, %v829_v21  ;;  %v2586_v21 = vld [vmem:[%s3042_s8 + $0x10] sm:$0xff] }
 0x4d9   : > { %1297 = vmatpush.msrb.mxu2 %v2456_v32  ;;  %v2588_v32 = vld [vmem:[%s3042_s8 + $0x20] sm:$0xff] }
 0x4db   : > { %1298 = vmatpush.msrb.mxu2 %v2457_v33 }
 0x4e2   : > { %v1181_v16 = vpop.f32.mrf.mxu0 }
 0x4e3   : > { %v808_v49 = vpop.xlane.xlu1 %807  ;;  %1213 = vrot.lane.b32.xlu0 %v1181_v16, %s2866_s27 }
 0x4e4   : > { %2544 = vrcp.f32 %v808_v49 }
 0x4e5   : > { %2546 = vrcp.f32 %v811_v6 }
 0x4ea   : > { %v2545_v26 = vpop.eup %2544  ;;  %v1184_v22 = vpop.f32.mrf.mxu0 }
 0x4eb   : > { %1215 = vrot.lane.b32.xlu2 %v1184_v22, %s2866_s27  ;;  %v830_v24 = vmul.f32 %v2545_v26, %v3474_v57  ;;  %v814_v29 = vpop.xlane.xlu1 %813  ;;  %v2547_v30 = vpop.eup %2546  ;;  %v2587_v22 = vld [vmem:[%s3042_s8 + $0x18] sm:$0xff] }
 0x4ec   : > { %2548 = vrcp.f32 %v814_v29  ;;  %v831_v59 = vmul.f32 %v2547_v30, %v3432_v2 }
 0x4ed   : > { %2233 = vmatmul.msk.f32.gmra.mxu2 %vm745_vm12, %v830_v24 }
 0x4f2   : > { %v2549_v35 = vpop.eup %2548 }
 0x4f3   : > { %v1187_v58 = vpop.f32.mrf.mxu0  ;;  %v817_v4 = vpop.xlane.xlu0 %816  ;;  %v832_v7 = vmul.f32 %v2549_v35, %v3478_v50  ;;  %v2589_v35 = vld [vmem:[%s3042_s8 + $0x28] sm:$0xff] }
 0x4f4   : > { %1217 = vrot.lane.b32.xlu0 %v1187_v58, %s2866_s27  ;;  %2550 = vrcp.f32 %v817_v4 }
 0x4f5   : > { %2234 = vmatmul.msk.f32.gmra.mxu2 %vm745_vm12, %v831_v59 }
 0x4fa   : > { %v2551_v45 = vpop.eup %2550 }
 0x4fb   : > { %v1190_v36 = vpop.f32.mrf.mxu0  ;;  %v833_v47 = vmul.f32 %v2551_v45, %v3486_v56 }
 0x4fc   : > { %1219 = vrot.lane.b32.xlu1 %v1190_v36, %s2866_s27 }
 0x4fd   : > { %2235 = vmatmul.msk.f32.gmra.mxu2 %vm745_vm12, %v832_v7 }
 0x503   : > { %v2460_v2 = vpop.permute.xlu1 %2459 }
 0x504   : > { %v2461_v48 = vunpack.i.l.bf16 %v2460_v2  ;;  %v2462_v15 = vunpack.i.h.bf16 %v2460_v2  ;;  %v2590_v2 = vld [vmem:[%s3042_s8 + $0x30] sm:$0xff] }
 0x505   : > { %2236 = vmatmul.msk.f32.gmra.mxu2 %vm745_vm12, %v833_v47 }
 0x506   : > { %1299 = vmatpush.msrb.mxu2 %v2461_v48 }
 0x508   : > { %1300 = vmatpush.msrb.mxu2 %v2462_v15 }
 0x50f   : > { %v899_v43 = vpop.f32.mrf.mxu2 }
 0x535   : > { %v1193_v57 = vpop.f32.mrf.mxu0 }
 0x536   : > { %1221 = vrot.lane.b32.xlu2 %v1193_v57, %s2866_s27 }
 0x53d   : > { %v1196_v3 = vpop.f32.mrf.mxu0 }
 0x53e   : > { %1223 = vrot.lane.b32.xlu0 %v1196_v3, %s2866_s27 }
 0x543   : > { %v902_v52 = vpop.f32.mrf.mxu2 }
 0x545   : > { %v1199_v28 = vpop.f32.mrf.mxu0  ;;  %v1216_v46 = vpop.permute.xlu2 %1215 }
 0x546   : > { %1225 = vrot.lane.b32.xlu1 %v1199_v28, %s2866_s27  ;;  %v1238_v27 = vsel %vm671_vm11, %v902_v52, %v1216_v46 }
 0x54b   : > { %v905_v31 = vpop.f32.mrf.mxu2 }
 0x54d   : > { %v1202_v38 = vpop.f32.mrf.mxu0 }
 0x54e   : > { %1227 = vrot.lane.b32.xlu2 %v1202_v38, %s2866_s27 }
 0x555   : > { %v1214_v50 = vpop.permute.xlu0 %1213 }
 0x556   : > { %v1237_v10 = vsel %vm671_vm11, %v899_v43, %v1214_v50 }
 0x557   : > { %2261 = vmatmul.msk.f32.vlgmr.msrb.gmra.mxu2 %vm368_vm0, %v1237_v10  ;;  %v2591_v10 = vld [vmem:[%s3042_s8 + $0x38] sm:$0xff]  ;;  %s2064_s8 = sshll.u32 %s2061_s17, 4  ;;  %s2065_s8 = int_to_ptr.hbm [resolvable:$true] %s2064_s8 }
 0x558   : > { %s2786_s11 = sshra.s32 %s2065_s8, 4  ;;  %s2787_s11 = int_to_ptr.hbm [resolvable:$true] %s2786_s11 }
 0x559   : > { %s2788_s12 = scalar_lea.hbm %s2787_s11, 64  ;;  %p2793_p12 = scmp.lt.s32.totalorder %s2787_s11, %s3889_s6 }
 0x55a   : > { %p2789_p1 = scmp.ne.s32.totalorder %s2787_s11, %s2788_s12  ;;  %p2794_p8 = scmp.lt.s32.totalorder %s2792_s14, %s2788_s12 }
 0x55b   : > { %v908_v56 = vpop.f32.mrf.mxu2 }
 0x55c   : > { %p2790_p3 = pnand %p2789_p1, %p3002_p13  ;;  %p2795_p7 = por %p2794_p8, %p2793_p12 }
 0x55e   : > { %p2791_p5 = pneg %p2790_p3 }
 0x55f   : > { %2262 = vmatmul.msk.f32.gmra.mxu2 %vm368_vm0, %v1238_v27 }
 0x560   : > { %p2796_p9 = pnand %p2795_p7, %p2791_p5 }
 0x566   : > { %v1218_v39 = vpop.permute.xlu0 %1217 }
 0x567   : > { %v1239_v14 = vsel %vm671_vm11, %v905_v31, %v1218_v39 }
 0x568   : > { %2263 = vmatmul.msk.f32.gmra.mxu2 %vm368_vm0, %v1239_v14 }
 0x56e   : > { %v1220_v23 = vpop.permute.xlu1 %1219 }
 0x56f   : > { %v1240_v41 = vsel %vm671_vm11, %v908_v56, %v1220_v23 }
 0x570   : > { %2264 = vmatmul.msk.f32.gmra.mxu2 %vm368_vm0, %v1240_v41  ;;  %v911_v34 = vpop.f32.mrf.mxu2 }
 0x578   : > { %v914_v53 = vpop.f32.mrf.mxu2 }
 0x580   : > { %v917_v1 = vpop.f32.mrf.mxu2 }
 0x588   : > { %v920_v51 = vpop.f32.mrf.mxu2 }
 0x590   : > { %v1222_v62 = vpop.permute.xlu2 %1221 }
 0x591   : > { %v1241_v0 = vsel %vm671_vm11, %v911_v34, %v1222_v62 }
 0x592   : > { %2265 = vmatmul.msk.f32.gmra.mxu2 %vm368_vm0, %v1241_v0 }
 0x5a8   : > { %v1228_v37 = vpop.permute.xlu2 %1227 }
 0x5a9   : > { %v1244_v11 = vsel %vm671_vm11, %v920_v51, %v1228_v37 }
 0x5b0   : > { %v1224_v25 = vpop.permute.xlu0 %1223 }
 0x5b1   : > { %v1242_v44 = vsel %vm671_vm11, %v914_v53, %v1224_v25 }
 0x5b2   : > { %2266 = vmatmul.msk.f32.gmra.mxu2 %vm368_vm0, %v1242_v44 }
 0x5b8   : > { %v1226_v42 = vpop.permute.xlu1 %1225 }
 0x5b9   : > { %v1243_v63 = vsel %vm671_vm11, %v917_v1, %v1226_v42 }
 0x5ba   : > { %2267 = vmatmul.msk.f32.gmra.mxu2 %vm368_vm0, %v1243_v63 }
 0x5c2   : > { %2268 = vmatmul.msk.f32.gmra.mxu2 %vm368_vm0, %v1244_v11 }
 0x5da   : > { %v1302_v12 = vpop.f32.mrf.mxu2 }
 0x5db   : > { %v1326_v61 = vadd.f32 %v2584_v60, %v1302_v12 }
 0x5dd   : > { %v3544_v17 = vadd.f32 %v2465_v55, %v1326_v61 }
 0x5df   : > { %v1343_v5 = vsel %vm368_vm0, %v3544_v17, 0.0 }
 0x5e0   : > { %1344 = vadd.xlane.f32.xlu0 %v1343_v5 }
 0x5e2   : > { %v1305_v40 = vpop.f32.mrf.mxu2 }
 0x5e3   : > { %v1327_v13 = vadd.f32 %v2585_v8, %v1305_v40 }
 0x5e5   : > { %v3549_v18 = vadd.f32 %v2465_v55, %v1327_v13 }
 0x5e7   : > { %v1346_v54 = vsel %vm368_vm0, %v3549_v18, 0.0 }
 0x5e8   : > { %1347 = vadd.xlane.f32.xlu1 %v1346_v54 }
 0x5eb   : > { %v1308_v9 = vpop.f32.mrf.mxu2 }
 0x5ec   : > { %v1328_v16 = vadd.f32 %v2586_v21, %v1308_v9 }
 0x5ee   : > { %v3554_v49 = vadd.f32 %v2465_v55, %v1328_v16 }
 0x5f0   : > { %v1349_v6 = vsel %vm368_vm0, %v3554_v49, 0.0 }
 0x5f1   : > { %1350 = vadd.xlane.f32.xlu2 %v1349_v6 }
 0x5f3   : > { %v1311_v26 = vpop.f32.mrf.mxu2 }
 0x5f4   : > { %v1329_v24 = vadd.f32 %v2587_v22, %v1311_v26  ;;  %v1540_v26 = vld [vmem:[#allocation8 + $0x18] sm:$0xff]  ;;  %v1539_v22 = vld [vmem:[#allocation8 + $0x10] sm:$0xff] }
 0x5f5   : > { %1578 = vmatpush.msra.mxu0 %v1540_v26  ;;  %2300 = vmatpush.msrb.mxu1 %v1540_v26 }
 0x5f6   : > { %v3559_v29 = vadd.f32 %v2465_v55, %v1329_v24  ;;  %v1538_v24 = vld [vmem:[#allocation8 + $0x8] sm:$0xff] }
 0x5f7   : > { %1579 = vmatpush.msra.mxu0 %v1539_v22  ;;  %2301 = vmatpush.msrb.mxu1 %v1539_v22 }
 0x5f8   : > { %v1352_v19 = vsel %vm368_vm0, %v3559_v29, 0.0 }
 0x5f9   : > { %1353 = vadd.xlane.f32.xlu0 %v1352_v19  ;;  %1580 = vmatpush.msra.mxu0 %v1538_v24  ;;  %v1537_v19 = vld [vmem:[#allocation8] sm:$0xff] }
 0x5fa   : > { %2302 = vmatpush.msrb.mxu1 %v1538_v24 }
 0x5fb   : > { %1581 = vmatpush.msra.mxu0 %v1537_v19 }
 0x5fc   : > { %2303 = vmatpush.msrb.mxu1 %v1537_v19 }
 0x615   : > { %v1314_v30 = vpop.f32.mrf.mxu2 }
 0x616   : > { %v1330_v33 = vadd.f32 %v2588_v32, %v1314_v30 }
 0x618   : > { %v3564_v58 = vadd.f32 %v2465_v55, %v1330_v33 }
 0x61a   : > { %v1355_v59 = vsel %vm368_vm0, %v3564_v58, 0.0 }
 0x61b   : > { %1356 = vadd.xlane.f32.xlu1 %v1355_v59 }
 0x635   : > { %v1317_v4 = vpop.f32.mrf.mxu2 }
 0x636   : > { %v1331_v36 = vadd.f32 %v2589_v35, %v1317_v4 }
 0x638   : > { %v3569_v7 = vadd.f32 %v2465_v55, %v1331_v36 }
 0x63a   : > { %v1358_v45 = vsel %vm368_vm0, %v3569_v7, 0.0 }
 0x63b   : > { %1359 = vadd.xlane.f32.xlu2 %v1358_v45 }
 0x63d   : > { %v1320_v47 = vpop.f32.mrf.mxu2 }
 0x63e   : > { %v1332_v48 = vadd.f32 %v2590_v2, %v1320_v47 }
 0x640   : > { %v3574_v15 = vadd.f32 %v2465_v55, %v1332_v48 }
 0x642   : > { %v1361_v57 = vsel %vm368_vm0, %v3574_v15, 0.0 }
 0x643   : > { %1362 = vadd.xlane.f32.xlu1 %v1361_v57 }
 0x645   : > { %v1323_v43 = vpop.f32.mrf.mxu2 }
 0x646   : > { %v1333_v46 = vadd.f32 %v2591_v10, %v1323_v43 }
 0x648   : > { %v3587_v39 = vadd.f32 %v2465_v55, %v1333_v46 }
 0x64a   : > { %v1364_v41 = vsel %vm368_vm0, %v3587_v39, 0.0 }
 0x653   : > { %v1345_v3 = vpop.xlane.xlu0 %1344 }
 0x654   : > { %v1367_v28 = vmul.f32 %v1345_v3, %v3074_v20 }
 0x656   : > { %v3580_v38 = vsub.f32 %v3544_v17, %v1367_v28 }
 0x658   : > { %v1383_v50 = vmul.f32 %v3580_v38, %v3580_v38 }
 0x65a   : > { %v1391_v52 = vsel %vm368_vm0, %v1383_v50, 0.0 }
 0x65b   : > { %1392 = vadd.xlane.f32.xlu0 %v1391_v52  ;;  %v1348_v27 = vpop.xlane.xlu1 %1347 }
 0x65c   : > { %v1368_v31 = vmul.f32 %v1348_v27, %v3074_v20 }
 0x65e   : > { %v3590_v14 = vsub.f32 %v3549_v18, %v1368_v31 }
 0x660   : > { %v1384_v56 = vmul.f32 %v3590_v14, %v3590_v14 }
 0x662   : > { %v1394_v23 = vsel %vm368_vm0, %v1384_v56, 0.0 }
 0x663   : > { %1395 = vadd.xlane.f32.xlu2 %v1394_v23  ;;  %1365 = vadd.xlane.f32.xlu0 %v1364_v41  ;;  %v3642_v23 = vld [vmem:[#allocation11 + $0x3] ss:$0 sm:$0xff] }
 0x664   : > { %v1351_v34 = vpop.xlane.xlu2 %1350 }
 0x665   : > { %v1369_v62 = vmul.f32 %v1351_v34, %v3074_v20 }
 0x667   : > { %v3599_v0 = vsub.f32 %v3554_v49, %v1369_v62 }
 0x669   : > { %v1385_v53 = vmul.f32 %v3599_v0, %v3599_v0 }
 0x66b   : > { %v1397_v25 = vsel %vm368_vm0, %v1385_v53, 0.0  ;;  %v3645_v53 = vld [vmem:[#allocation11 + $0x4] ss:$0 sm:$0xff] }
 0x66c   : > { %v1354_v44 = vpop.xlane.xlu0 %1353  ;;  %1398 = vadd.xlane.f32.xlu1 %v1397_v25 }
 0x66d   : > { %v1370_v1 = vmul.f32 %v1354_v44, %v3074_v20 }
 0x66f   : > { %v3606_v42 = vsub.f32 %v3559_v29, %v1370_v1 }
 0x671   : > { %v1386_v63 = vmul.f32 %v3606_v42, %v3606_v42 }
 0x673   : > { %v1400_v37 = vsel %vm368_vm0, %v1386_v63, 0.0 }
 0x674   : > { %1401 = vadd.xlane.f32.xlu2 %v1400_v37 }
 0x68e   : > { %v1357_v51 = vpop.xlane.xlu1 %1356 }
 0x68f   : > { %v1371_v11 = vmul.f32 %v1357_v51, %v3074_v20 }
 0x691   : > { %v3613_v55 = vsub.f32 %v3564_v58, %v1371_v11 }
 0x693   : > { %v1387_v12 = vmul.f32 %v3613_v55, %v3613_v55 }
 0x695   : > { %v1403_v60 = vsel %vm368_vm0, %v1387_v12, 0.0 }
 0x696   : > { %1404 = vadd.xlane.f32.xlu0 %v1403_v60 }
 0x6ae   : > { %v1360_v61 = vpop.xlane.xlu2 %1359 }
 0x6af   : > { %v1372_v5 = vmul.f32 %v1360_v61, %v3074_v20 }
 0x6b1   : > { %v3620_v40 = vsub.f32 %v3569_v7, %v1372_v5 }
 0x6b3   : > { %v1388_v8 = vmul.f32 %v3620_v40, %v3620_v40 }
 0x6b5   : > { %v1406_v13 = vsel %vm368_vm0, %v1388_v8, 0.0 }
 0x6b6   : > { %v1363_v54 = vpop.xlane.xlu1 %1362  ;;  %1407 = vadd.xlane.f32.xlu1 %v1406_v13 }
 0x6b7   : > { %v1373_v9 = vmul.f32 %v1363_v54, %v3074_v20 }
 0x6b9   : > { %v3627_v21 = vsub.f32 %v3574_v15, %v1373_v9 }
 0x6bb   : > { %v1389_v16 = vmul.f32 %v3627_v21, %v3627_v21 }
 0x6bd   : > { %v1409_v6 = vsel %vm368_vm0, %v1389_v16, 0.0 }
 0x6be   : > { %1410 = vadd.xlane.f32.xlu2 %v1409_v6 }
 0x6ce   : > { %v1393_v30 = vpop.xlane.xlu0 %1392 }
 0x6cf   : > { %v1415_v32 = vmul.f32 %v1393_v30, %v3074_v20 }
 0x6d1   : > { %v1423_v33 = vadd.f32 1e-05, %v1415_v32 }
 0x6d3   : > { %2552 = vrsqrt.f32 %v1423_v33  ;;  %vm1437_vm14 = vweird.f32 %v1423_v33 }
 0x6d6   : > { %v1366_v59 = vpop.xlane.xlu0 %1365  ;;  %v1396_v4 = vpop.xlane.xlu2 %1395 }
 0x6d7   : > { %v1374_v35 = vmul.f32 %v1366_v59, %v3074_v20  ;;  %v1416_v36 = vmul.f32 %v1396_v4, %v3074_v20 }
 0x6d9   : > { %v2553_v45 = vpop.eup %2552  ;;  %v3636_v47 = vsub.f32 %v3587_v39, %v1374_v35  ;;  %v1424_v2 = vadd.f32 1e-05, %v1416_v36 }
 0x6da   : > { %v1432_v48 = vmul.f32 %v2553_v45, %v1423_v33  ;;  %vm1438_vm13 = vweird.f32 %v2553_v45 }
 0x6db   : > { %2554 = vrsqrt.f32 %v1424_v2  ;;  %v1390_v57 = vmul.f32 %v3636_v47, %v3636_v47  ;;  %vm1439_vm15 = vmor %vm1437_vm14, %vm1438_vm13  ;;  %vm1447_vm2 = vweird.f32 %v1424_v2 }
 0x6dc   : > { %v1433_v3 = vmul.f32 %v2553_v45, %v1432_v48 }
 0x6dd   : > { %v1412_v28 = vsel %vm368_vm0, %v1390_v57, 0.0 }
 0x6de   : > { %v1434_v43 = vmul.f32 0.5, %v1433_v3  ;;  %1413 = vadd.xlane.f32.xlu0 %v1412_v28 }
 0x6df   : > { %v1399_v50 = vpop.xlane.xlu1 %1398 }
 0x6e0   : > { %v1435_v10 = vsub.f32 1.5, %v1434_v43  ;;  %v1417_v46 = vmul.f32 %v1399_v50, %v3074_v20 }
 0x6e1   : > { %v2555_v52 = vpop.eup %2554 }
 0x6e2   : > { %v1436_v27 = vmul.f32 %v2553_v45, %v1435_v10  ;;  %v1442_v31 = vmul.f32 %v2555_v52, %v1424_v2  ;;  %v1425_v56 = vadd.f32 1e-05, %v1417_v46  ;;  %vm1448_vm1 = vweird.f32 %v2555_v52 }
 0x6e3   : > { %vm1449_vm3 = vmor %vm1447_vm2, %vm1448_vm1 }
 0x6e4   : > { %v1440_v41 = vsel %vm1439_vm15, %v2553_v45, %v1436_v27  ;;  %v1443_v34 = vmul.f32 %v2555_v52, %v1442_v31  ;;  %2556 = vrsqrt.f32 %v1425_v56  ;;  %vm1457_vm5 = vweird.f32 %v1425_v56 }
 0x6e5   : > { %v1511_v62 = vmul.f32 %v1440_v41, %v3580_v38 }
 0x6e6   : > { %v1444_v25 = vmul.f32 0.5, %v1443_v34 }
 0x6e7   : > { %v1520_v44 = vmul.f32 %v3642_v23, %v1511_v62  ;;  %v1402_v1 = vpop.xlane.xlu2 %1401 }
 0x6e8   : > { %v1445_v63 = vsub.f32 1.5, %v1444_v25  ;;  %v1418_v37 = vmul.f32 %v1402_v1, %v3074_v20 }
 0x6e9   : > { %v1529_v51 = vadd.f32 %v3645_v53, %v1520_v44 }
 0x6ea   : > { %v2557_v11 = vpop.eup %2556  ;;  %v1446_v12 = vmul.f32 %v2555_v52, %v1445_v63  ;;  %v1426_v60 = vadd.f32 1e-05, %v1418_v37 }
 0x6eb   : > { %v1452_v61 = vmul.f32 %v2557_v11, %v1425_v56  ;;  %2269 = vmatmul.msk.f32.vlgmr.msra.gmra.mxu0 %vm368_vm0, %v1529_v51  ;;  %vm1458_vm4 = vweird.f32 %v2557_v11 }
 0x6ec   : > { %v1450_v38 = vsel %vm1449_vm3, %v2555_v52, %v1446_v12  ;;  %2558 = vrsqrt.f32 %v1426_v60  ;;  %vm1459_vm6 = vmor %vm1457_vm5, %vm1458_vm4  ;;  %vm1467_vm8 = vweird.f32 %v1426_v60 }
 0x6ed   : > { %v1512_v5 = vmul.f32 %v1450_v38, %v3590_v14  ;;  %v1453_v8 = vmul.f32 %v2557_v11, %v1452_v61 }
 0x6ef   : > { %v1454_v13 = vmul.f32 0.5, %v1453_v8  ;;  %v1521_v54 = vmul.f32 %v3642_v23, %v1512_v5 }
 0x6f1   : > { %v1455_v9 = vsub.f32 1.5, %v1454_v13  ;;  %v1530_v16 = vadd.f32 %v3645_v53, %v1521_v54 }
 0x6f2   : > { %v2559_v6 = vpop.eup %2558 }
 0x6f3   : > { %v1456_v26 = vmul.f32 %v2557_v11, %v1455_v9  ;;  %v1462_v22 = vmul.f32 %v2559_v6, %v1426_v60  ;;  %2270 = vmatmul.msk.f32.vlgmr.msrb.gmra.mxu1 %vm368_vm0, %v1530_v16  ;;  %vm1468_vm7 = vweird.f32 %v2559_v6 }
 0x6f4   : > { %vm1469_vm9 = vmor %vm1467_vm8, %vm1468_vm7 }
 0x6f5   : > { %v1460_v24 = vsel %vm1459_vm6, %v2557_v11, %v1456_v26  ;;  %v1463_v19 = vmul.f32 %v2559_v6, %v1462_v22 }
 0x6f6   : > { %v1513_v30 = vmul.f32 %v1460_v24, %v3599_v0 }
 0x6f7   : > { %v1464_v14 = vmul.f32 0.5, %v1463_v19 }
 0x6f8   : > { %v1522_v32 = vmul.f32 %v3642_v23, %v1513_v30 }
 0x6f9   : > { %v1465_v33 = vsub.f32 1.5, %v1464_v14 }
 0x6fa   : > { %v1531_v59 = vadd.f32 %v3645_v53, %v1522_v32 }
 0x6fb   : > { %v1466_v4 = vmul.f32 %v2559_v6, %v1465_v33 }
 0x6fc   : > { %2271 = vmatmul.msk.f32.gmra.mxu1 %vm368_vm0, %v1531_v59 }
 0x6fd   : > { %v1470_v35 = vsel %vm1469_vm9, %v2559_v6, %v1466_v4 }
 0x6fe   : > { %v1514_v36 = vmul.f32 %v1470_v35, %v3606_v42 }
 0x700   : > { %v1523_v45 = vmul.f32 %v3642_v23, %v1514_v36 }
 0x702   : > { %v1532_v2 = vadd.f32 %v3645_v53, %v1523_v45 }
 0x704   : > { %2272 = vmatmul.msk.f32.gmra.mxu1 %vm368_vm0, %v1532_v2 }
 0x709   : > { %v1405_v0 = vpop.xlane.xlu0 %1404 }
 0x70a   : > { %v1419_v48 = vmul.f32 %v1405_v0, %v3074_v20 }
 0x70c   : > { %v1427_v57 = vadd.f32 1e-05, %v1419_v48 }
 0x70e   : > { %2560 = vrsqrt.f32 %v1427_v57  ;;  %vm1477_vm11 = vweird.f32 %v1427_v57 }
 0x714   : > { %v2561_v3 = vpop.eup %2560 }
 0x715   : > { %v1472_v28 = vmul.f32 %v2561_v3, %v1427_v57  ;;  %vm1478_vm10 = vweird.f32 %v2561_v3 }
 0x716   : > { %vm1479_vm13 = vmor %vm1477_vm11, %vm1478_vm10 }
 0x717   : > { %v1473_v43 = vmul.f32 %v2561_v3, %v1472_v28 }
 0x719   : > { %v1474_v50 = vmul.f32 0.5, %v1473_v43 }
 0x71b   : > { %v1475_v10 = vsub.f32 1.5, %v1474_v50 }
 0x71d   : > { %v1476_v46 = vmul.f32 %v2561_v3, %v1475_v10 }
 0x71f   : > { %v1480_v42 = vsel %vm1479_vm13, %v2561_v3, %v1476_v46 }
 0x720   : > { %v1515_v52 = vmul.f32 %v1480_v42, %v3613_v55 }
 0x722   : > { %v1524_v27 = vmul.f32 %v3642_v23, %v1515_v52 }
 0x724   : > { %v1533_v31 = vadd.f32 %v3645_v53, %v1524_v27  ;;  %v1966_v27 = vld [vmem:[#allocation10 + $0x38] sm:$0xff] }
 0x725   : > { %2000 = vmatpush.msrb.mxu3 %v1966_v27 }
 0x726   : > { %2273 = vmatmul.msk.f32.gmra.mxu1 %vm368_vm0, %v1533_v31 }
 0x729   : > { %v1408_v56 = vpop.xlane.xlu1 %1407 }
 0x72a   : > { %v1420_v41 = vmul.f32 %v1408_v56, %v3074_v20 }
 0x72c   : > { %v1428_v34 = vadd.f32 1e-05, %v1420_v41 }
 0x72e   : > { %2562 = vrsqrt.f32 %v1428_v34  ;;  %vm1487_vm15 = vweird.f32 %v1428_v34 }
 0x731   : > { %v1411_v62 = vpop.xlane.xlu2 %1410 }
 0x732   : > { %v1421_v25 = vmul.f32 %v1411_v62, %v3074_v20 }
 0x734   : > { %v2563_v44 = vpop.eup %2562  ;;  %v1429_v1 = vadd.f32 1e-05, %v1421_v25 }
 0x735   : > { %v1482_v63 = vmul.f32 %v2563_v44, %v1428_v34  ;;  %vm1488_vm14 = vweird.f32 %v2563_v44  ;;  %v1965_v34 = vld [vmem:[#allocation10 + $0x30] sm:$0xff] }
 0x736   : > { %2564 = vrsqrt.f32 %v1429_v1  ;;  %vm1489_vm1 = vmor %vm1487_vm15, %vm1488_vm14  ;;  %vm1497_vm3 = vweird.f32 %v1429_v1  ;;  %2001 = vmatpush.msrb.mxu3 %v1965_v34 }
 0x737   : > { %v1483_v37 = vmul.f32 %v2563_v44, %v1482_v63 }
 0x739   : > { %v1484_v55 = vmul.f32 0.5, %v1483_v37 }
 0x73b   : > { %v1485_v51 = vsub.f32 1.5, %v1484_v55 }
 0x73c   : > { %v2565_v11 = vpop.eup %2564 }
 0x73d   : > { %v1486_v12 = vmul.f32 %v2563_v44, %v1485_v51  ;;  %v1492_v60 = vmul.f32 %v2565_v11, %v1429_v1  ;;  %vm1498_vm2 = vweird.f32 %v2565_v11  ;;  %v1964_v1 = vld [vmem:[#allocation10 + $0x28] sm:$0xff] }
 0x73e   : > { %vm1499_vm4 = vmor %vm1497_vm3, %vm1498_vm2  ;;  %2002 = vmatpush.msrb.mxu3 %v1964_v1 }
 0x73f   : > { %v1490_v61 = vsel %vm1489_vm1, %v2563_v44, %v1486_v12  ;;  %v1493_v38 = vmul.f32 %v2565_v11, %v1492_v60  ;;  %v1963_v12 = vld [vmem:[#allocation10 + $0x20] sm:$0xff] }
 0x740   : > { %v1516_v5 = vmul.f32 %v1490_v61, %v3620_v40  ;;  %2003 = vmatpush.msrb.mxu3 %v1963_v12 }
 0x741   : > { %v1494_v8 = vmul.f32 0.5, %v1493_v38 }
 0x742   : > { %v1525_v13 = vmul.f32 %v3642_v23, %v1516_v5 }
 0x743   : > { %v1495_v54 = vsub.f32 1.5, %v1494_v8  ;;  %v1962_v8 = vld [vmem:[#allocation10 + $0x18] sm:$0xff] }
 0x744   : > { %v1534_v9 = vadd.f32 %v3645_v53, %v1525_v13  ;;  %2004 = vmatpush.msrb.mxu3 %v1962_v8 }
 0x745   : > { %v1496_v16 = vmul.f32 %v2565_v11, %v1495_v54 }
 0x746   : > { %2274 = vmatmul.msk.f32.gmra.mxu1 %vm368_vm0, %v1534_v9 }
 0x747   : > { %v1500_v6 = vsel %vm1499_vm4, %v2565_v11, %v1496_v16 }
 0x748   : > { %v1517_v26 = vmul.f32 %v1500_v6, %v3627_v21  ;;  %v3679_v21 = vld [vmem:[#allocation11 + $0x6] ss:$0 sm:$0xff] }
 0x74a   : > { %v1526_v22 = vmul.f32 %v3642_v23, %v1517_v26  ;;  %v1961_v26 = vld [vmem:[#allocation10 + $0x10] sm:$0xff] }
 0x74b   : > { %2005 = vmatpush.msrb.mxu3 %v1961_v26 }
 0x74c   : > { %v1535_v24 = vadd.f32 %v3645_v53, %v1526_v22 }
 0x74e   : > { %2275 = vmatmul.msk.f32.gmra.mxu1 %vm368_vm0, %v1535_v24 }
 0x751   : > { %v1414_v40 = vpop.xlane.xlu0 %1413 }
 0x752   : > { %v1422_v19 = vmul.f32 %v1414_v40, %v3074_v20 }
 0x754   : > { %v1430_v30 = vadd.f32 1e-05, %v1422_v19 }
 0x756   : > { %2566 = vrsqrt.f32 %v1430_v30  ;;  %vm1507_vm6 = vweird.f32 %v1430_v30 }
 0x75c   : > { %v2567_v14 = vpop.eup %2566 }
 0x75d   : > { %v1502_v32 = vmul.f32 %v2567_v14, %v1430_v30  ;;  %vm1508_vm5 = vweird.f32 %v2567_v14 }
 0x75e   : > { %vm1509_vm7 = vmor %vm1507_vm6, %vm1508_vm5 }
 0x75f   : > { %v1503_v33 = vmul.f32 %v2567_v14, %v1502_v32 }
 0x761   : > { %v1504_v59 = vmul.f32 0.5, %v1503_v33 }
 0x763   : > { %v1505_v4 = vsub.f32 1.5, %v1504_v59 }
 0x765   : > { %v1506_v35 = vmul.f32 %v2567_v14, %v1505_v4 }
 0x767   : > { %v1510_v36 = vsel %vm1509_vm7, %v2567_v14, %v1506_v35  ;;  %v1960_v14 = vld [vmem:[#allocation10 + $0x8] sm:$0xff] }
 0x768   : > { %v1583_v45 = vpop.f32.mrf.mxu0  ;;  %v1518_v2 = vmul.f32 %v1510_v36, %v3636_v47  ;;  %2006 = vmatpush.msrb.mxu3 %v1960_v14 }
 0x769   : > { %v3683_v0 = vadd.f32 %v3679_v21, %v1583_v45  ;;  %v1959_v45 = vld [vmem:[#allocation10] sm:$0xff] }
 0x76a   : > { %v1527_v20 = vmul.f32 %v3642_v23, %v1518_v2  ;;  %2007 = vmatpush.msrb.mxu3 %v1959_v45 }
 0x76b   : > { %v3687_v48 = vmul.f32 0.70710677, %v3683_v0 }
 0x76c   : > { %v1536_v57 = vadd.f32 %v3645_v53, %v1527_v20 }
 0x76d   : > { %v1623_v3 = vmul.f32 %v3687_v48, %v3687_v48 }
 0x76e   : > { %2276 = vmatmul.msk.f32.gmra.mxu1 %vm368_vm0, %v1536_v57 }
 0x76f   : > { %v3693_v28 = vmin.f32 %v1623_v3, 16.0 }
 0x770   : > { %v1586_v43 = vpop.f32.mrf.mxu1 }
 0x771   : > { %v1625_v47 = vmul.f32 2.1237322e-06, %v3693_v28  ;;  %v1636_v50 = vmul.f32 3.8918573e-05, %v3693_v28  ;;  %v3698_v10 = vadd.f32 %v3679_v21, %v1586_v43 }
 0x773   : > { %v1626_v23 = vadd.f32 0.00028619796, %v1625_v47  ;;  %v1637_v46 = vadd.f32 0.001143296, %v1636_v50  ;;  %v3701_v42 = vmul.f32 0.70710677, %v3698_v10 }
 0x775   : > { %v1627_v53 = vmul.f32 %v1626_v23, %v3693_v28  ;;  %v1638_v52 = vmul.f32 %v1637_v46, %v3693_v28  ;;  %v1663_v31 = vmul.f32 %v3701_v42, %v3701_v42 }
 0x777   : > { %v1628_v56 = vadd.f32 0.0036580483, %v1627_v53  ;;  %v1639_v41 = vadd.f32 0.014752088, %v1638_v52  ;;  %v3707_v62 = vmin.f32 %v1663_v31, 16.0 }
 0x779   : > { %v1640_v25 = vmul.f32 %v1639_v41, %v3693_v28  ;;  %v1589_v44 = vpop.f32.mrf.mxu1  ;;  %v1629_v63 = vmul.f32 %v1628_v56, %v3693_v28  ;;  %v1665_v37 = vmul.f32 2.1237322e-06, %v3707_v62  ;;  %v1676_v55 = vmul.f32 3.8918573e-05, %v3707_v62 }
 0x77a   : > { %v3714_v51 = vadd.f32 %v3679_v21, %v1589_v44 }
 0x77b   : > { %v1641_v11 = vadd.f32 0.112945676, %v1640_v25  ;;  %v1666_v60 = vadd.f32 0.00028619796, %v1665_v37  ;;  %v1677_v61 = vadd.f32 0.001143296, %v1676_v55 }
 0x77c   : > { %v3718_v5 = vmul.f32 0.70710677, %v3714_v51  ;;  %v1630_v13 = vadd.f32 0.05243302, %v1629_v63 }
 0x77d   : > { %v1642_v38 = vmul.f32 %v1641_v11, %v3693_v28  ;;  %v1667_v54 = vmul.f32 %v1666_v60, %v3707_v62  ;;  %v1678_v9 = vmul.f32 %v1677_v61, %v3707_v62 }
 0x77e   : > { %v1703_v6 = vmul.f32 %v3718_v5, %v3718_v5  ;;  %v1631_v32 = vmul.f32 %v1630_v13, %v3693_v28 }
 0x77f   : > { %v1643_v16 = vadd.f32 0.4994258, %v1642_v38  ;;  %v1668_v22 = vadd.f32 0.0036580483, %v1667_v54  ;;  %v1679_v24 = vadd.f32 0.014752088, %v1678_v9 }
 0x780   : > { %v3725_v19 = vmin.f32 %v1703_v6, 16.0  ;;  %v1632_v57 = vadd.f32 0.18741608, %v1631_v32 }
 0x781   : > { %v1644_v40 = vmul.f32 %v1643_v16, %v3693_v28  ;;  %v1592_v30 = vpop.f32.mrf.mxu1  ;;  %v1680_v33 = vmul.f32 %v1679_v24, %v3707_v62  ;;  %v1669_v4 = vmul.f32 %v1668_v22, %v3707_v62 }
 0x782   : > { %v1705_v35 = vmul.f32 2.1237322e-06, %v3725_v19  ;;  %v3732_v36 = vadd.f32 %v3679_v21, %v1592_v30  ;;  %v1716_v20 = vmul.f32 3.8918573e-05, %v3725_v19  ;;  %v1633_v31 = vmul.f32 %v1632_v57, %v3693_v28 }
 0x783   : > { %v1645_v59 = vadd.f32 1.0, %v1644_v40  ;;  %v1681_v2 = vadd.f32 0.112945676, %v1680_v33  ;;  %v1670_v47 = vadd.f32 0.05243302, %v1669_v4 }
 0x784   : > { %v1706_v43 = vadd.f32 0.00028619796, %v1705_v35  ;;  %v1717_v50 = vadd.f32 0.001143296, %v1716_v20  ;;  %v3737_v23 = vmul.f32 0.70710677, %v3732_v36 }
 0x785   : > { %2568 = vrcp.f32 %v1645_v59  ;;  %v1682_v3 = vmul.f32 %v1681_v2, %v3707_v62  ;;  %v1671_v34 = vmul.f32 %v1670_v47, %v3707_v62  ;;  %v1634_v60 = vadd.f32 1.1283791, %v1633_v31 }
 0x786   : > { %v1707_v53 = vmul.f32 %v1706_v43, %v3725_v19  ;;  %v1718_v52 = vmul.f32 %v1717_v50, %v3725_v19  ;;  %v1743_v27 = vmul.f32 %v3737_v23, %v3737_v23  ;;  %v1655_v28 = vand.u32 2147483647, %v1645_v59 }
 0x787   : > { %v1683_v46 = vadd.f32 0.4994258, %v1682_v3  ;;  %v1657_v38 = vand.u32 2147483648, %v1645_v59  ;;  %v1672_v8 = vadd.f32 0.18741608, %v1671_v34  ;;  %vm1651_vm9 = vweird.f32 %v1645_v59 }
 0x788   : > { %v1708_v25 = vadd.f32 0.0036580483, %v1707_v53  ;;  %v1719_v44 = vadd.f32 0.014752088, %v1718_v52  ;;  %v3746_v1 = vmin.f32 %v1743_v27, 16.0  ;;  %v1635_v30 = vmul.f32 %v1634_v60, %v3687_v48 }
 0x789   : > { %v1684_v56 = vmul.f32 %v1683_v46, %v3707_v62  ;;  %vm1656_vm11 = vcmp.eq.f32.partialorder %v1655_v28, 8.507059e+37  ;;  %v1658_v14 = vor.u32 1.1754944e-38, %v1657_v38  ;;  %v1673_v32 = vmul.f32 %v1672_v8, %v3707_v62 }
 0x78a   : > { %v1720_v55 = vmul.f32 %v1719_v44, %v3725_v19  ;;  %v1745_v11 = vmul.f32 2.1237322e-06, %v3746_v1  ;;  %v1756_v12 = vmul.f32 3.8918573e-05, %v3746_v1  ;;  %v1709_v13 = vmul.f32 %v1708_v25, %v3725_v19 }
 0x78b   : > { %v2569_v41 = vpop.eup %2568  ;;  %v1685_v37 = vadd.f32 1.0, %v1684_v56  ;;  %v1674_v50 = vadd.f32 1.1283791, %v1673_v32  ;;  %v1607_v34 = vmul.f32 0.5, %v3683_v0 }
 0x78c   : > { %v1647_v63 = vmul.f32 %v2569_v41, %v1645_v59  ;;  %vm1652_vm8 = vweird.f32 %v2569_v41  ;;  %v1721_v9 = vadd.f32 0.112945676, %v1720_v55  ;;  %v1746_v16 = vadd.f32 0.00028619796, %v1745_v11 }
 0x78d   : > { %2570 = vrcp.f32 %v1685_v37  ;;  %v1757_v6 = vadd.f32 0.001143296, %v1756_v12  ;;  %vm1653_vm10 = vmor %vm1651_vm9, %vm1652_vm8  ;;  %v1710_v35 = vadd.f32 0.05243302, %v1709_v13  ;;  %v1697_v46 = vand.u32 2147483648, %v1685_v37 }
 0x78e   : > { %v1648_v61 = vsub.f32 1.0, %v1647_v63  ;;  %v1722_v22 = vmul.f32 %v1721_v9, %v3725_v19  ;;  %v1747_v24 = vmul.f32 %v1746_v16, %v3746_v1  ;;  %v1695_v56 = vand.u32 2147483647, %v1685_v37 }
 0x78f   : > { %v1758_v40 = vmul.f32 %v1757_v6, %v3746_v1  ;;  %v1711_v52 = vmul.f32 %v1710_v35, %v3725_v19  ;;  %vm1691_vm14 = vweird.f32 %v1685_v37  ;;  %v1675_v11 = vmul.f32 %v1674_v50, %v3701_v42 }
 0x790   : > { %v1649_v54 = vmul.f32 %v2569_v41, %v1648_v61  ;;  %v1723_v45 = vadd.f32 0.4994258, %v1722_v22  ;;  %v1748_v57 = vadd.f32 0.0036580483, %v1747_v24  ;;  %v1698_v12 = vor.u32 1.1754944e-38, %v1697_v46 }
 0x791   : > { %v1759_v2 = vadd.f32 0.014752088, %v1758_v40  ;;  %v1712_v60 = vadd.f32 0.18741608, %v1711_v52  ;;  %vm1696_vm1 = vcmp.eq.f32.partialorder %v1695_v56, 8.507059e+37 }
 0x792   : > { %v1650_v26 = vadd.f32 %v2569_v41, %v1649_v54  ;;  %v1724_v43 = vmul.f32 %v1723_v45, %v3725_v19 }
 0x793   : > { %v2571_v33 = vpop.eup %2570  ;;  %v1760_v47 = vmul.f32 %v1759_v2, %v3746_v1 }
 0x794   : > { %v1654_v4 = vsel %vm1653_vm10, %v2569_v41, %v1650_v26  ;;  %v1687_v20 = vmul.f32 %v2571_v33, %v1685_v37  ;;  %v1725_v62 = vadd.f32 1.0, %v1724_v43  ;;  %vm1692_vm13 = vweird.f32 %v2571_v33 }
 0x795   : > { %v1659_v59 = vsel %vm1656_vm11, %v1658_v14, %v1654_v4  ;;  %v1761_v27 = vadd.f32 0.112945676, %v1760_v47  ;;  %v1749_v41 = vmul.f32 %v1748_v57, %v3746_v1  ;;  %vm1693_vm15 = vmor %vm1691_vm14, %vm1692_vm13  ;;  %v1713_v37 = vmul.f32 %v1712_v60, %v3725_v19 }
 0x796   : > { %v1660_v3 = vmul.f32 %v1659_v59, %v1635_v30  ;;  %v1688_v48 = vsub.f32 1.0, %v1687_v20  ;;  %2572 = vrcp.f32 %v1725_v62  ;;  %v1608_v26 = vmul.f32 0.5, %v3698_v10 }
 0x797   : > { %v1762_v63 = vmul.f32 %v1761_v27, %v3746_v1  ;;  %v1750_v28 = vadd.f32 0.05243302, %v1749_v41  ;;  %v1714_v40 = vadd.f32 1.1283791, %v1713_v37  ;;  %v1737_v30 = vand.u32 2147483648, %v1725_v62 }
 0x798   : > { %v2277_v53 = vclamps-f32 %v1660_v3, 1.0  ;;  %v1689_v31 = vmul.f32 %v2571_v33, %v1688_v48  ;;  %v1735_v4 = vand.u32 2147483647, %v1725_v62  ;;  %vm1731_vm3 = vweird.f32 %v1725_v62 }
 0x799   : > { %v1763_v38 = vadd.f32 0.4994258, %v1762_v63  ;;  %v1751_v16 = vmul.f32 %v1750_v28, %v3746_v1  ;;  %v1738_v10 = vor.u32 1.1754944e-38, %v1737_v30  ;;  %v1715_v57 = vmul.f32 %v1714_v40, %v3718_v5 }
 0x79a   : > { %v1943_v25 = vadd.f32 1.0, %v2277_v53  ;;  %v1690_v44 = vadd.f32 %v2571_v33, %v1689_v31  ;;  %vm1736_vm5 = vcmp.eq.f32.partialorder %v1735_v4, 8.507059e+37 }
 0x79b   : > { %v1764_v13 = vmul.f32 %v1763_v38, %v3746_v1  ;;  %v1752_v19 = vadd.f32 0.18741608, %v1751_v16  ;;  %v1610_v16 = vmul.f32 0.5, %v3732_v36 }
 0x79c   : > { %v1951_v55 = vmul.f32 %v1943_v25, %v1607_v34  ;;  %v1694_v61 = vsel %vm1693_vm15, %v2571_v33, %v1690_v44  ;;  %v2573_v54 = vpop.eup %2572  ;;  %v1609_v44 = vmul.f32 0.5, %v3714_v51 }
 0x79d   : > { %v1699_v8 = vsel %vm1696_vm1, %v1698_v12, %v1694_v61  ;;  %v1727_v9 = vmul.f32 %v2573_v54, %v1725_v62  ;;  %v1765_v42 = vadd.f32 1.0, %v1764_v13  ;;  %vm1732_vm2 = vweird.f32 %v2573_v54 }
 0x79e   : > { %2285 = vmatmul.msk.f32.vlgmr.msrb.gmra.mxu3 %vm745_vm12, %v1951_v55  ;;  %v1700_v0 = vmul.f32 %v1699_v8, %v1675_v11  ;;  %vm1733_vm4 = vmor %vm1731_vm3, %vm1732_vm2  ;;  %v1753_v43 = vmul.f32 %v1752_v19, %v3746_v1 }
 0x79f   : > { %v1728_v22 = vsub.f32 1.0, %v1727_v9  ;;  %2574 = vrcp.f32 %v1765_v42  ;;  %v1775_v31 = vand.u32 2147483647, %v1765_v42  ;;  %v1777_v56 = vand.u32 2147483648, %v1765_v42 }
 0x7a0   : > { %v2278_v6 = vclamps-f32 %v1700_v0, 1.0  ;;  %v1754_v27 = vadd.f32 1.1283791, %v1753_v43  ;;  %vm1771_vm7 = vweird.f32 %v1765_v42 }
 0x7a1   : > { %v1729_v33 = vmul.f32 %v2573_v54, %v1728_v22  ;;  %v1778_v12 = vor.u32 1.1754944e-38, %v1777_v56  ;;  %vm1776_vm9 = vcmp.eq.f32.partialorder %v1775_v31, 8.507059e+37 }
 0x7a2   : > { %v1944_v32 = vadd.f32 1.0, %v2278_v6  ;;  %v1755_v61 = vmul.f32 %v1754_v27, %v3737_v23 }
 0x7a3   : > { %v1595_v24 = vpop.f32.mrf.mxu1  ;;  %v1730_v45 = vadd.f32 %v2573_v54, %v1729_v33 }
 0x7a4   : > { %v3770_v14 = vadd.f32 %v3679_v21, %v1595_v24  ;;  %v1952_v2 = vmul.f32 %v1944_v32, %v1608_v26 }
 0x7a5   : > { %v2575_v20 = vpop.eup %2574  ;;  %v1734_v3 = vsel %vm1733_vm4, %v2573_v54, %v1730_v45 }
 0x7a6   : > { %v3773_v35 = vmul.f32 0.70710677, %v3770_v14  ;;  %2286 = vmatmul.msk.f32.gmra.mxu3 %vm745_vm12, %v1952_v2  ;;  %v1739_v47 = vsel %vm1736_vm5, %v1738_v10, %v1734_v3  ;;  %v1767_v50 = vmul.f32 %v2575_v20, %v1765_v42  ;;  %vm1772_vm6 = vweird.f32 %v2575_v20 }
 0x7a7   : > { %v1740_v46 = vmul.f32 %v1739_v47, %v1715_v57  ;;  %vm1773_vm8 = vmor %vm1771_vm7, %vm1772_vm6 }
 0x7a8   : > { %v1783_v59 = vmul.f32 %v3773_v35, %v3773_v35  ;;  %v1768_v53 = vsub.f32 1.0, %v1767_v50 }
 0x7a9   : > { %v2279_v41 = vclamps-f32 %v1740_v46, 1.0 }
 0x7aa   : > { %v1784_v48 = vmin.f32 %v1783_v59, 16.0  ;;  %v1769_v34 = vmul.f32 %v2575_v20, %v1768_v53 }
 0x7ab   : > { %v1945_v1 = vadd.f32 1.0, %v2279_v41 }
 0x7ac   : > { %v1785_v52 = vmul.f32 2.1237322e-06, %v1784_v48  ;;  %v1796_v62 = vmul.f32 3.8918573e-05, %v1784_v48  ;;  %v1770_v63 = vadd.f32 %v2575_v20, %v1769_v34 }
 0x7ad   : > { %v1953_v60 = vmul.f32 %v1945_v1, %v1609_v44 }
 0x7ae   : > { %v1786_v5 = vadd.f32 0.00028619796, %v1785_v52  ;;  %v1797_v25 = vadd.f32 0.001143296, %v1796_v62  ;;  %v1774_v28 = vsel %vm1773_vm8, %v2575_v20, %v1770_v63 }
 0x7af   : > { %v1779_v8 = vsel %vm1776_vm9, %v1778_v12, %v1774_v28  ;;  %2287 = vmatmul.msk.f32.gmra.mxu3 %vm745_vm12, %v1953_v60  ;;  %v1611_v28 = vmul.f32 0.5, %v3770_v14 }
 0x7b0   : > { %v1787_v55 = vmul.f32 %v1786_v5, %v1784_v48  ;;  %v1798_v11 = vmul.f32 %v1797_v25, %v1784_v48  ;;  %v1780_v13 = vmul.f32 %v1779_v8, %v1755_v61 }
 0x7b2   : > { %v1799_v38 = vadd.f32 0.014752088, %v1798_v11  ;;  %v1788_v0 = vadd.f32 0.0036580483, %v1787_v55  ;;  %v2280_v37 = vclamps-f32 %v1780_v13, 1.0 }
 0x7b4   : > { %v1800_v54 = vmul.f32 %v1799_v38, %v1784_v48  ;;  %v1789_v9 = vmul.f32 %v1788_v0, %v1784_v48  ;;  %v1946_v6 = vadd.f32 1.0, %v2280_v37 }
 0x7b6   : > { %v1801_v51 = vadd.f32 0.112945676, %v1800_v54  ;;  %v1954_v22 = vmul.f32 %v1946_v6, %v1610_v16  ;;  %v1790_v24 = vadd.f32 0.05243302, %v1789_v9 }
 0x7b8   : > { %v1802_v42 = vmul.f32 %v1801_v51, %v1784_v48  ;;  %2288 = vmatmul.msk.f32.gmra.mxu3 %vm745_vm12, %v1954_v22  ;;  %v1791_v30 = vmul.f32 %v1790_v24, %v1784_v48 }
 0x7ba   : > { %v1803_v26 = vadd.f32 0.4994258, %v1802_v42  ;;  %v1792_v32 = vadd.f32 0.18741608, %v1791_v30 }
 0x7bc   : > { %v1804_v23 = vmul.f32 %v1803_v26, %v1784_v48  ;;  %v1793_v36 = vmul.f32 %v1792_v32, %v1784_v48 }
 0x7be   : > { %v1805_v40 = vadd.f32 1.0, %v1804_v23  ;;  %v1794_v3 = vadd.f32 1.1283791, %v1793_v36 }
 0x7c0   : > { %2576 = vrcp.f32 %v1805_v40  ;;  %v1817_v20 = vand.u32 2147483648, %v1805_v40  ;;  %v1815_v47 = vand.u32 2147483647, %v1805_v40  ;;  %vm1811_vm11 = vweird.f32 %v1805_v40 }
 0x7c1   : > { %v1795_v56 = vmul.f32 %v1794_v3, %v3773_v35 }
 0x7c2   : > { %v1818_v48 = vor.u32 1.1754944e-38, %v1817_v20  ;;  %vm1816_vm14 = vcmp.eq.f32.partialorder %v1815_v47, 8.507059e+37 }
 0x7c3   : > { %v1598_v33 = vpop.f32.mrf.mxu1 }
 0x7c4   : > { %v3786_v4 = vadd.f32 %v3679_v21, %v1598_v33 }
 0x7c6   : > { %v2577_v19 = vpop.eup %2576  ;;  %v3789_v45 = vmul.f32 0.70710677, %v3786_v4 }
 0x7c7   : > { %v1807_v2 = vmul.f32 %v2577_v19, %v1805_v40  ;;  %vm1812_vm10 = vweird.f32 %v2577_v19 }
 0x7c8   : > { %v1823_v10 = vmul.f32 %v3789_v45, %v3789_v45  ;;  %vm1813_vm13 = vmor %vm1811_vm11, %vm1812_vm10 }
 0x7c9   : > { %v1808_v59 = vsub.f32 1.0, %v1807_v2 }
 0x7ca   : > { %v1824_v57 = vmin.f32 %v1823_v10, 16.0 }
 0x7cb   : > { %v1809_v43 = vmul.f32 %v2577_v19, %v1808_v59  ;;  %v1601_v50 = vpop.f32.mrf.mxu1 }
 0x7cc   : > { %v1825_v46 = vmul.f32 2.1237322e-06, %v1824_v57  ;;  %v1836_v53 = vmul.f32 3.8918573e-05, %v1824_v57  ;;  %v3794_v52 = vadd.f32 %v3679_v21, %v1601_v50 }
 0x7cd   : > { %v1810_v62 = vadd.f32 %v2577_v19, %v1809_v43 }
 0x7ce   : > { %v1826_v27 = vadd.f32 0.00028619796, %v1825_v46  ;;  %v1837_v31 = vadd.f32 0.001143296, %v1836_v53  ;;  %v3798_v34 = vmul.f32 0.70710677, %v3794_v52 }
 0x7cf   : > { %v1814_v41 = vsel %vm1813_vm13, %v2577_v19, %v1810_v62 }
 0x7d0   : > { %v1819_v5 = vsel %vm1816_vm14, %v1818_v48, %v1814_v41  ;;  %v1827_v25 = vmul.f32 %v1826_v27, %v1824_v57  ;;  %v1838_v44 = vmul.f32 %v1837_v31, %v1824_v57  ;;  %v1863_v63 = vmul.f32 %v3798_v34, %v3798_v34 }
 0x7d1   : > { %v1820_v1 = vmul.f32 %v1819_v5, %v1795_v56 }
 0x7d2   : > { %v1828_v55 = vadd.f32 0.0036580483, %v1827_v25  ;;  %v1839_v11 = vadd.f32 0.014752088, %v1838_v44  ;;  %v1864_v12 = vmin.f32 %v1863_v63, 16.0 }
 0x7d3   : > { %v2281_v60 = vclamps-f32 %v1820_v1, 1.0 }
 0x7d4   : > { %v1840_v61 = vmul.f32 %v1839_v11, %v1824_v57  ;;  %v1865_v35 = vmul.f32 2.1237322e-06, %v1864_v12  ;;  %v1876_v38 = vmul.f32 3.8918573e-05, %v1864_v12  ;;  %v1829_v0 = vmul.f32 %v1828_v55, %v1824_v57 }
 0x7d5   : > { %v1947_v8 = vadd.f32 1.0, %v2281_v60 }
 0x7d6   : > { %v1841_v13 = vadd.f32 0.112945676, %v1840_v61  ;;  %v1866_v54 = vadd.f32 0.00028619796, %v1865_v35  ;;  %v1877_v51 = vadd.f32 0.001143296, %v1876_v38 }
 0x7d7   : > { %v1955_v37 = vmul.f32 %v1947_v8, %v1611_v28  ;;  %v1830_v6 = vadd.f32 0.05243302, %v1829_v0 }
 0x7d8   : > { %v1842_v9 = vmul.f32 %v1841_v13, %v1824_v57  ;;  %v1867_v16 = vmul.f32 %v1866_v54, %v1864_v12  ;;  %v1878_v42 = vmul.f32 %v1877_v51, %v1864_v12 }
 0x7d9   : > { %2289 = vmatmul.msk.f32.gmra.mxu3 %vm745_vm12, %v1955_v37  ;;  %v1831_v14 = vmul.f32 %v1830_v6, %v1824_v57 }
 0x7da   : > { %v1843_v26 = vadd.f32 0.4994258, %v1842_v9  ;;  %v1868_v22 = vadd.f32 0.0036580483, %v1867_v16  ;;  %v1879_v24 = vadd.f32 0.014752088, %v1878_v42 }
 0x7db   : > { %v1832_v36 = vadd.f32 0.18741608, %v1831_v14 }
 0x7dc   : > { %v1844_v23 = vmul.f32 %v1843_v26, %v1824_v57  ;;  %v1880_v40 = vmul.f32 %v1879_v24, %v1864_v12  ;;  %v1869_v32 = vmul.f32 %v1868_v22, %v1864_v12 }
 0x7dd   : > { %v1833_v3 = vmul.f32 %v1832_v36, %v1824_v57  ;;  %v1613_v36 = vmul.f32 0.5, %v3794_v52 }
 0x7de   : > { %v1845_v30 = vadd.f32 1.0, %v1844_v23  ;;  %v1881_v33 = vadd.f32 0.112945676, %v1880_v40  ;;  %v1870_v2 = vadd.f32 0.05243302, %v1869_v32 }
 0x7df   : > { %v1834_v53 = vadd.f32 1.1283791, %v1833_v3 }
 0x7e0   : > { %2578 = vrcp.f32 %v1845_v30  ;;  %v1882_v19 = vmul.f32 %v1881_v33, %v1864_v12  ;;  %v1871_v47 = vmul.f32 %v1870_v2, %v1864_v12  ;;  %v1857_v62 = vand.u32 2147483648, %v1845_v30 }
 0x7e1   : > { %v1855_v27 = vand.u32 2147483647, %v1845_v30  ;;  %vm1851_vm1 = vweird.f32 %v1845_v30  ;;  %v1835_v1 = vmul.f32 %v1834_v53, %v3789_v45  ;;  %v1612_v45 = vmul.f32 0.5, %v3786_v4 }
 0x7e2   : > { %v1883_v10 = vadd.f32 0.4994258, %v1882_v19  ;;  %v1872_v31 = vadd.f32 0.18741608, %v1871_v47  ;;  %v1858_v25 = vor.u32 1.1754944e-38, %v1857_v62 }
 0x7e3   : > { %vm1856_vm3 = vcmp.eq.f32.partialorder %v1855_v27, 8.507059e+37 }
 0x7e4   : > { %v1884_v59 = vmul.f32 %v1883_v10, %v1864_v12  ;;  %v1873_v55 = vmul.f32 %v1872_v31, %v1864_v12 }
 0x7e6   : > { %v2579_v20 = vpop.eup %2578  ;;  %v1885_v50 = vadd.f32 1.0, %v1884_v59  ;;  %v1874_v38 = vadd.f32 1.1283791, %v1873_v55 }
 0x7e7   : > { %v1847_v43 = vmul.f32 %v2579_v20, %v1845_v30  ;;  %vm1852_vm15 = vweird.f32 %v2579_v20 }
 0x7e8   : > { %2580 = vrcp.f32 %v1885_v50  ;;  %vm1853_vm2 = vmor %vm1851_vm1, %vm1852_vm15  ;;  %v1895_v8 = vand.u32 2147483647, %v1885_v50  ;;  %v1897_v0 = vand.u32 2147483648, %v1885_v50  ;;  %vm1891_vm5 = vweird.f32 %v1885_v50 }
 0x7e9   : > { %v1848_v46 = vsub.f32 1.0, %v1847_v43  ;;  %v1875_v6 = vmul.f32 %v1874_v38, %v3798_v34 }
 0x7ea   : > { %v1898_v26 = vor.u32 1.1754944e-38, %v1897_v0  ;;  %vm1896_vm7 = vcmp.eq.f32.partialorder %v1895_v8, 8.507059e+37 }
 0x7eb   : > { %v1849_v48 = vmul.f32 %v2579_v20, %v1848_v46  ;;  %v1604_v56 = vpop.f32.mrf.mxu1 }
 0x7ec   : > { %v3805_v41 = vadd.f32 %v3679_v21, %v1604_v56 }
 0x7ed   : > { %v1850_v5 = vadd.f32 %v2579_v20, %v1849_v48 }
 0x7ee   : > { %v3808_v57 = vmul.f32 0.70710677, %v3805_v41  ;;  %v2581_v44 = vpop.eup %2580 }
 0x7ef   : > { %v1854_v63 = vsel %vm1853_vm2, %v2579_v20, %v1850_v5  ;;  %v1887_v60 = vmul.f32 %v2581_v44, %v1885_v50  ;;  %vm1892_vm4 = vweird.f32 %v2581_v44 }
 0x7f0   : > { %v1859_v11 = vsel %vm1856_vm3, %v1858_v25, %v1854_v63  ;;  %v1903_v61 = vmul.f32 %v3808_v57, %v3808_v57  ;;  %vm1893_vm6 = vmor %vm1891_vm5, %vm1892_vm4 }
 0x7f1   : > { %v1860_v21 = vmul.f32 %v1859_v11, %v1835_v1  ;;  %v1888_v28 = vsub.f32 1.0, %v1887_v60 }
 0x7f2   : > { %v1904_v35 = vmin.f32 %v1903_v61, 16.0 }
 0x7f3   : > { %v2282_v13 = vclamps-f32 %v1860_v21, 1.0  ;;  %v1889_v54 = vmul.f32 %v2581_v44, %v1888_v28  ;;  %v1614_v21 = vmul.f32 0.5, %v3805_v41 }
 0x7f4   : > { %v1905_v51 = vmul.f32 2.1237322e-06, %v1904_v35  ;;  %v1916_v37 = vmul.f32 3.8918573e-05, %v1904_v35 }
 0x7f5   : > { %v1948_v9 = vadd.f32 1.0, %v2282_v13  ;;  %v1890_v12 = vadd.f32 %v2581_v44, %v1889_v54 }
 0x7f6   : > { %v1906_v16 = vadd.f32 0.00028619796, %v1905_v51  ;;  %v1917_v42 = vadd.f32 0.001143296, %v1916_v37 }
 0x7f7   : > { %v1956_v22 = vmul.f32 %v1948_v9, %v1612_v45  ;;  %v1894_v24 = vsel %vm1893_vm6, %v2581_v44, %v1890_v12 }
 0x7f8   : > { %v1907_v23 = vmul.f32 %v1906_v16, %v1904_v35  ;;  %v1918_v40 = vmul.f32 %v1917_v42, %v1904_v35  ;;  %v1899_v14 = vsel %vm1896_vm7, %v1898_v26, %v1894_v24 }
 0x7f9   : > { %2290 = vmatmul.msk.f32.gmra.mxu3 %vm745_vm12, %v1956_v22  ;;  %v1900_v30 = vmul.f32 %v1899_v14, %v1875_v6 }
 0x7fa   : > { %v1919_v32 = vadd.f32 0.014752088, %v1918_v40  ;;  %v1908_v4 = vadd.f32 0.0036580483, %v1907_v23 }
 0x7fb   : > { %v2283_v19 = vclamps-f32 %v1900_v30, 1.0 }
 0x7fc   : > { %v1920_v33 = vmul.f32 %v1919_v32, %v1904_v35  ;;  %v1909_v34 = vmul.f32 %v1908_v4, %v1904_v35 }
 0x7fd   : > { %v1949_v10 = vadd.f32 1.0, %v2283_v19 }
 0x7fe   : > { %v1921_v2 = vadd.f32 0.112945676, %v1920_v33  ;;  %v1910_v43 = vadd.f32 0.05243302, %v1909_v34 }
 0x7ff   : > { %v1957_v20 = vmul.f32 %v1949_v10, %v1613_v36 }
 0x800   : > { %v1922_v59 = vmul.f32 %v1921_v2, %v1904_v35  ;;  %v1911_v46 = vmul.f32 %v1910_v43, %v1904_v35 }
 0x801   : > { %2291 = vmatmul.msk.f32.gmra.mxu3 %vm745_vm12, %v1957_v20 }
 0x802   : > { %v1923_v3 = vadd.f32 0.4994258, %v1922_v59  ;;  %v1912_v53 = vadd.f32 0.18741608, %v1911_v46 }
 0x804   : > { %v1924_v47 = vmul.f32 %v1923_v3, %v1904_v35  ;;  %v1913_v48 = vmul.f32 %v1912_v53, %v1904_v35  ;;  %v2469_v35 = vld [vmem:[#allocation11 + $0x5] ss:$0 sm:$0xff] }
 0x806   : > { %v1925_v50 = vadd.f32 1.0, %v1924_v47  ;;  %v1914_v52 = vadd.f32 1.1283791, %v1913_v48 }
 0x808   : > { %2582 = vrcp.f32 %v1925_v50  ;;  %v1937_v56 = vand.u32 2147483648, %v1925_v50  ;;  %v1935_v25 = vand.u32 2147483647, %v1925_v50  ;;  %vm1931_vm9 = vweird.f32 %v1925_v50 }
 0x809   : > { %v1915_v63 = vmul.f32 %v1914_v52, %v3808_v57 }
 0x80a   : > { %v1938_v1 = vor.u32 1.1754944e-38, %v1937_v56  ;;  %vm1936_vm11 = vcmp.eq.f32.partialorder %v1935_v25, 8.507059e+37 }
 0x80e   : > { %v2583_v62 = vpop.eup %2582 }
 0x80f   : > { %v1927_v27 = vmul.f32 %v2583_v62, %v1925_v50  ;;  %vm1932_vm8 = vweird.f32 %v2583_v62 }
 0x810   : > { %vm1933_vm10 = vmor %vm1931_vm9, %vm1932_vm8 }
 0x811   : > { %v1928_v31 = vsub.f32 1.0, %v1927_v27 }
 0x813   : > { %v1929_v5 = vmul.f32 %v2583_v62, %v1928_v31 }
 0x815   : > { %v1930_v44 = vadd.f32 %v2583_v62, %v1929_v5 }
 0x817   : > { %v1934_v55 = vsel %vm1933_vm10, %v2583_v62, %v1930_v44 }
 0x818   : > { %v1939_v11 = vsel %vm1936_vm11, %v1938_v1, %v1934_v55 }
 0x819   : > { %v1940_v60 = vmul.f32 %v1939_v11, %v1915_v63 }
 0x81b   : > { %v2284_v61 = vclamps-f32 %v1940_v60, 1.0 }
 0x81d   : > { %v1950_v28 = vadd.f32 1.0, %v2284_v61 }
 0x81f   : > { %v1958_v38 = vmul.f32 %v1950_v28, %v1614_v21 }
 0x821   : > { %v2009_v8 = vpop.f32.mrf.mxu3  ;;  %2292 = vmatmul.msk.f32.gmra.mxu3 %vm745_vm12, %v1958_v38 }
 0x822   : > { %v2010_v0 = vadd.f32 %v2469_v35, %v2009_v8 }
 0x824   : > { %v2033_v13 = vadd.f32 %v2010_v0, %v3544_v17 }
 0x826   : > { %2041 = vst.msk [vmem:[%s3824_s9] sm:$0xff] %vm368_vm0, %v2033_v13 }
 0x829   : > { %v2012_v41 = vpop.f32.mrf.mxu3 }
 0x82a   : > { %v2013_v57 = vadd.f32 %v2469_v35, %v2012_v41 }
 0x82c   : > { %v2034_v54 = vadd.f32 %v2013_v57, %v3549_v18 }
 0x82e   : > { %2042 = vst.msk [vmem:[%s3824_s9 + $0x8] sm:$0xff] %vm368_vm0, %v2034_v54 }
 0x832   : > { %v2015_v51 = vpop.f32.mrf.mxu3 }
 0x833   : > { %v2016_v37 = vadd.f32 %v2469_v35, %v2015_v51 }
 0x835   : > { %v2035_v17 = vadd.f32 %v2016_v37, %v3554_v49 }
 0x837   : > { %2043 = vst.msk [vmem:[%s3824_s9 + $0x10] sm:$0xff] %vm368_vm0, %v2035_v17 }
 0x83b   : > { %v2018_v45 = vpop.f32.mrf.mxu3 }
 0x83c   : > { %v2019_v9 = vadd.f32 %v2469_v35, %v2018_v45 }
 0x83e   : > { %v2036_v12 = vadd.f32 %v2019_v9, %v3559_v29 }
 0x840   : > { %2044 = vst.msk [vmem:[%s3824_s9 + $0x18] sm:$0xff] %vm368_vm0, %v2036_v12 }
 0x85c   : > { %v2021_v16 = vpop.f32.mrf.mxu3 }
 0x85d   : > { %v2022_v18 = vadd.f32 %v2469_v35, %v2021_v16 }
 0x85f   : > { %v2037_v42 = vadd.f32 %v2022_v18, %v3564_v58 }
 0x861   : > { %2045 = vst.msk [vmem:[%s3824_s9 + $0x20] sm:$0xff] %vm368_vm0, %v2037_v42 }
 0x87c   : > { %v2024_v6 = vpop.f32.mrf.mxu3 }
 0x87d   : > { %v2025_v26 = vadd.f32 %v2469_v35, %v2024_v6 }
 0x87f   : > { %v2038_v49 = vadd.f32 %v2025_v26, %v3569_v7 }
 0x881   : > { %2046 = vst.msk [vmem:[%s3824_s9 + $0x28] sm:$0xff] %vm368_vm0, %v2038_v49 }
 0x884   : > { %v2027_v22 = vpop.f32.mrf.mxu3 }
 0x885   : > { %v2028_v24 = vadd.f32 %v2469_v35, %v2027_v22 }
 0x887   : > { %v2039_v29 = vadd.f32 %v2028_v24, %v3574_v15 }
 0x889   : > { %2047 = vst.msk [vmem:[%s3824_s9 + $0x30] sm:$0xff] %vm368_vm0, %v2039_v29 }
 0x8a4   : > { %v2030_v58 = vpop.f32.mrf.mxu3 }
 0x8a5   : > { %v2031_v23 = vadd.f32 %v2469_v35, %v2030_v58 }
 0x8a7   : > { %v2040_v7 = vadd.f32 %v2031_v23, %v3587_v39 }
 0x8a9   : > { %2048 = vst.msk [vmem:[%s3824_s9 + $0x38] sm:$0xff] %vm368_vm0, %v2040_v7 }
 0x8aa   : > { %2799 = shalt.err (!%p2796_p9)
}
 0x8ab   : > { %s2867_s7 = smov 128   ;;  %s2868_s9 = smov 8  }
 0x8ac   : > { %2326 = dma.vmem_to_hbm [thread:$0]  (%p3002_p13), %s2063_s18, 1024, %s2065_s8, %s2050_s29, %s2867_s7, %s2867_s7, %s2868_s9  }
 0x8ad PF: > { %s2079_s10 = sand.u32 1, %s2838_s21   ;;  %p3902_p10 = scmp.ge.s32.totalorder %s2850_s24, 2 }
 0x8ae   : > { %s2080_s26 = scalar_lea.sflag [#allocation4], %s2079_s10 }
 0x8af   : > { %p2349_p11 = pnand %p3902_p10, %p3007_p4 }
 0x8b1   : > { %p2350_p0 = pneg %p2349_p11 }
 0x8b3   : > { %2833 = dma.done.wait (%p2350_p0), %s2080_s26, 1024  }
 0x8b4   : > { %2835 = vsyncadd (%p2350_p0), %s2080_s26, 4294966272  ;;  %p22_p2 = scmp.ge.s32.totalorder %s2982_s15, 4   ;;  %s3903_s21 = smov %s2842_s22 }
 0x8b5   : > { %s3904_s22 = smov %s2846_s23  ;;  %s3905_s23 = smov %s2994_s20 }
 0x8b6   : > { %s3906_s24 = smov %s2982_s15  ;;  %24 = sbr.rel (!%p22_p2) target bundleno = 8 (0x8), region = 109 }
 0x8bb   :  { %2086 = vsyncpa [#allocation3], 1 }
 0x8bc   :  { %2088 = vsyncpa [#allocation3 + $0x1], 1 }
 0x8bd   :  { %2089 = vsyncpa [#allocation6], 1 }
 0x8be   :  { %2090 = vsyncpa [#allocation9], 1 }
 0x8bf   :  { %2091 = vsyncpa [#allocation12], 1 }
 0x8c0   :  { %2092 = vsyncpa [#allocation4], 1 }
 0x8c1   :  { %2094 = vsyncpa [#allocation4 + $0x1], 1 }

</bundles_post_ra>
